<compile_context>
chip_gen: v7x
topology: tpu7x:2x2x1
jax: 0.10.0
libtpu: 0.0.40
codegen_flags: <defaults>
</compile_context>

<pallas_src>
import functools
import math

import jax
import jax.numpy as jnp
from jax import lax
from jax.experimental import pallas as pl
from jax.experimental.pallas import tpu as pltpu


# --------------------------------------------------------------------------
# small utilities
# --------------------------------------------------------------------------

def _round_up(n, m):
    return ((n + m - 1) // m) * m


def _vmem_limit_bytes():
    """Generation-dependent VMEM limit (~75% of physical capacity)."""
    try:
        cap = int(pltpu.get_tpu_info().vmem_capacity_bytes)
    except Exception:
        cap = 64 * 1024 * 1024
    return int(max(32 * 1024 * 1024, min(cap * 3 // 4, 100 * 1024 * 1024)))


_BUFFERED_OK = None  # does this jax/Mosaic honor pipeline_mode=pl.Buffered(1)?


def _probe_buffered_support():
    """Compile + run a tiny kernel that uses pipeline_mode=pl.Buffered(1)."""
    def k(x_ref, o_ref):
        o_ref[...] = x_ref[...] + 1.0
    try:
        spec = pl.BlockSpec((8, 128), lambda i: (0, 0),
                            pipeline_mode=pl.Buffered(1))
        fn = pl.pallas_call(
            k, grid=(1,), in_specs=[spec],
            out_specs=pl.BlockSpec((8, 128), lambda i: (0, 0)),
            out_shape=jax.ShapeDtypeStruct((8, 128), jnp.float32))
        jax.block_until_ready(fn(jnp.zeros((8, 128), jnp.float32)))
        return True
    except Exception:
        return False


def _check_buffered_support():
    global _BUFFERED_OK
    if _BUFFERED_OK is None:
        _BUFFERED_OK = _probe_buffered_support()
    return _BUFFERED_OK


def _resident(shape):
    """BlockSpec for a weight whose block index never changes.

    Single-buffered when supported (constant index => double-buffering only
    wastes VMEM); falls back to the default spec otherwise.
    """
    imap = lambda *_args: (0,) * len(shape)
    if _BUFFERED_OK:
        try:
            return pl.BlockSpec(shape, imap, pipeline_mode=pl.Buffered(1))
        except Exception:
            pass
    return pl.BlockSpec(shape, imap)


# --------------------------------------------------------------------------
# in-kernel math helpers
# --------------------------------------------------------------------------

def _layer_norm(x, gamma, beta, eps=1e-5):
    mu = jnp.mean(x, axis=-1, keepdims=True)
    var = jnp.mean((x - mu) ** 2, axis=-1, keepdims=True)
    return (x - mu) * lax.rsqrt(var + eps) * gamma + beta


def _gelu_exact(x):
    # nn.GELU() default = exact erf-based GELU.
    # TODO(synk): on v5e (no bf16 VALU/EUP) the tanh approximation may be
    # cheaper if a bundle dump shows this kernel VALU-bound.
    return 0.5 * x * (1.0 + lax.erf(x * (1.0 / math.sqrt(2.0))))


# --------------------------------------------------------------------------
# Pallas kernel bodies
# --------------------------------------------------------------------------

def _ln_qkv_kernel(x_ref, g_ref, b_ref, w_ref, bias_ref, q_ref, k_ref, v_ref):
    """LN1 + fused QKV projection for one (batch, seq-tile) block."""
    D = x_ref.shape[-1]
    xn = _layer_norm(x_ref[...], g_ref[...], b_ref[...]).astype(jnp.bfloat16)
    # weights pre-transposed to (D, 3D) bf16; 1/sqrt(dh) folded into Q columns
    qkv = jnp.dot(xn, w_ref[...], preferred_element_type=jnp.float32)
    qkv = qkv + bias_ref[...]
    q_ref[...] = qkv[:, :D].astype(jnp.bfloat16)
    k_ref[...] = qkv[:, D:2 * D].astype(jnp.bfloat16)
    v_ref[...] = qkv[:, 2 * D:].astype(jnp.bfloat16)


def _attn_kernel(q_ref, k_ref, v_ref, x_ref, wo_ref, bo_ref, o_ref,
                 m_sc, l_sc, acc_sc, *, n_heads, d_head, seq_len, kv_tile,
                 masked):
    """Flash-style self-attention with the Wo projection and first residual
    fused.  Grid = (batch, q-tile, kv-tile); the kv axis is the innermost
    ("arbitrary") reduction axis with running (m, l, acc) in VMEM scratch.
    Heads are a statically-unrolled loop of plain 2-D matmuls over lane slices
    of the (tile, D) blocks, so no in-kernel relayouts are needed and the
    output store is a lane-dense (tq, D) block."""
    kv = pl.program_id(2)
    nkv = pl.num_programs(2)
    dh = d_head

    @pl.when(kv == 0)
    def _init():
        m_sc[...] = jnp.full(m_sc.shape, -jnp.inf, m_sc.dtype)
        l_sc[...] = jnp.zeros(l_sc.shape, l_sc.dtype)
        acc_sc[...] = jnp.zeros(acc_sc.shape, acc_sc.dtype)

    if masked:  # static: only emitted when the sequence was padded
        tq = q_ref.shape[0]
        tk = k_ref.shape[0]
        kpos = kv * kv_tile + lax.broadcasted_iota(jnp.int32, (tq, tk), 1)
        key_mask = kpos < seq_len

    nt_dims = (((1,), (1,)), ((), ()))  # A @ B^T without an explicit transpose

    for h in range(n_heads):                          # static unroll
        q_h = q_ref[:, h * dh:(h + 1) * dh]           # (tq, dh) bf16
        k_h = k_ref[:, h * dh:(h + 1) * dh]           # (tk, dh) bf16
        v_h = v_ref[:, h * dh:(h + 1) * dh]           # (tk, dh) bf16
        s = lax.dot_general(q_h, k_h, nt_dims,
                            preferred_element_type=jnp.float32)  # (tq, tk)
        if masked:
            s = jnp.where(key_mask, s, -jnp.inf)
        m_prev = m_sc[h]                               # (tq, 1)
        m_new = jnp.maximum(m_prev, jnp.max(s, axis=-1, keepdims=True))
        alpha = jnp.exp(m_prev - m_new)
        p = jnp.exp(s - m_new)
        l_sc[h] = alpha * l_sc[h] + jnp.sum(p, axis=-1, keepdims=True)
        acc_sc[h] = alpha * acc_sc[h] + jnp.dot(
            p.astype(jnp.bfloat16), v_h, preferred_element_type=jnp.float32)
        m_sc[h] = m_new

    @pl.when(kv == nkv - 1)
    def _finalize():
        inv_l = pl.reciprocal(l_sc[...], approx=True)       # (H, tq, 1)
        attn = None
        for h in range(n_heads):                            # fused Wo
            ctx_h = (acc_sc[h] * inv_l[h]).astype(jnp.bfloat16)   # (tq, dh)
            part = jnp.dot(ctx_h, wo_ref[h],
                           preferred_element_type=jnp.float32)    # (tq, D)
            attn = part if attn is None else attn + part
        # lane-dense (tq, D) store: attention output + bias + first residual
        o_ref[...] = x_ref[...] + attn + bo_ref[...]


def _ffn_kernel(x_ref, g_ref, b_ref, w1_ref, b1_ref, w2_ref, b2_ref, o_ref):
    """LN2 + GELU FFN + second residual for one (batch, seq-tile) block."""
    x1 = x_ref[...]                                           # (t, D) f32
    xn = _layer_norm(x1, g_ref[...], b_ref[...]).astype(jnp.bfloat16)
    h = jnp.dot(xn, w1_ref[...], preferred_element_type=jnp.float32) + b1_ref[...]
    h = _gelu_exact(h).astype(jnp.bfloat16)
    ffn = jnp.dot(h, w2_ref[...], preferred_element_type=jnp.float32) + b2_ref[...]
    o_ref[...] = (x1 + ffn).astype(o_ref.dtype)


# --------------------------------------------------------------------------
# layer / encoder wrappers
# --------------------------------------------------------------------------

def encoder_layer_apply(x, prep, n_heads, *, seq_len, seq_tile, row_tile):
    """x: (B, S_pad, D) f32 (already padded to a multiple of seq_tile)."""
    B, S_pad, D = x.shape
    H = n_heads
    dh = D // H
    dff = prep["w1_t"].shape[1]
    tq = tk = seq_tile
    rt = row_tile
    n_seq = S_pad // seq_tile
    n_row = S_pad // rt
    Np = B * S_pad
    vmem = _vmem_limit_bytes()

    rows_params = pltpu.CompilerParams(
        dimension_semantics=("parallel", "parallel"), vmem_limit_bytes=vmem)
    attn_params = pltpu.CompilerParams(
        dimension_semantics=("parallel", "parallel", "arbitrary"),
        vmem_limit_bytes=vmem)

    # ---- 1. LN1 + fused QKV projection ------------------------------------
    qkv_cost = pl.CostEstimate(
        flops=2 * Np * D * 3 * D + 10 * Np * D,
        transcendentals=Np,
        bytes_accessed=Np * D * 4 + 3 * Np * D * 2 + 3 * D * D * 2 + 6 * D * 4)
    q, k, v = pl.pallas_call(
        _ln_qkv_kernel,
        grid=(B, n_row),
        in_specs=[pl.BlockSpec((None, rt, D), lambda b, i: (b, i, 0)),
                  _resident((1, D)), _resident((1, D)),
                  _resident((D, 3 * D)), _resident((1, 3 * D))],
        out_specs=[pl.BlockSpec((None, rt, D), lambda b, i: (b, i, 0))] * 3,
        out_shape=[jax.ShapeDtypeStruct((B, S_pad, D), jnp.bfloat16)] * 3,
        compiler_params=rows_params,
        cost_estimate=qkv_cost,
    )(x, prep["g1"], prep["b1"], prep["wqkv_t"], prep["bqkv"])

    # ---- 2. attention + fused Wo + first residual --------------------------
    masked = seq_len < S_pad
    attn_cost = pl.CostEstimate(
        flops=4 * B * H * S_pad * S_pad * dh + 2 * Np * D * D
              + 6 * B * H * S_pad * S_pad,
        transcendentals=B * H * S_pad * S_pad,
        bytes_accessed=3 * Np * D * 2 + 2 * Np * D * 4 + D * D * 2 + D * 4)
    x1 = pl.pallas_call(
        functools.partial(_attn_kernel, n_heads=H, d_head=dh,
                          seq_len=seq_len, kv_tile=tk, masked=masked),
        grid=(B, n_seq, n_seq),
        in_specs=[pl.BlockSpec((None, tq, D), lambda b, i, j: (b, i, 0)),
                  pl.BlockSpec((None, tk, D), lambda b, i, j: (b, j, 0)),
                  pl.BlockSpec((None, tk, D), lambda b, i, j: (b, j, 0)),
                  pl.BlockSpec((None, tq, D), lambda b, i, j: (b, i, 0)),
                  _resident((H, dh, D)), _resident((1, D))],
        out_specs=pl.BlockSpec((None, tq, D), lambda b, i, j: (b, i, 0)),
        out_shape=jax.ShapeDtypeStruct((B, S_pad, D), jnp.float32),
        scratch_shapes=[pltpu.VMEM((H, tq, 1), jnp.float32),
                        pltpu.VMEM((H, tq, 1), jnp.float32),
                        pltpu.VMEM((H, tq, dh), jnp.float32)],
        compiler_params=attn_params,
        cost_estimate=attn_cost,
    )(q, k, v, x, prep["wo_h"], prep["bo"])

    # ---- 3. LN2 + GELU FFN + second residual -------------------------------
    ffn_cost = pl.CostEstimate(
        flops=4 * Np * D * dff + 20 * Np * dff,
        transcendentals=Np * dff + Np,
        bytes_accessed=2 * Np * D * 4 + 2 * D * dff * 2 + (D + dff) * 4)
    out = pl.pallas_call(
        _ffn_kernel,
        grid=(B, n_row),
        in_specs=[pl.BlockSpec((None, rt, D), lambda b, i: (b, i, 0)),
                  _resident((1, D)), _resident((1, D)),
                  _resident((D, dff)), _resident((1, dff)),
                  _resident((dff, D)), _resident((1, D))],
        out_specs=pl.BlockSpec((None, rt, D), lambda b, i: (b, i, 0)),
        out_shape=jax.ShapeDtypeStruct((B, S_pad, D), jnp.float32),
        compiler_params=rows_params,
        cost_estimate=ffn_cost,
    )(x1, prep["g2"], prep["b2"], prep["w1_t"], prep["fb1"],
      prep["w2_t"], prep["fb2"])

    return out


def encoder_forward(x, prepped_layers, *, n_heads, seq_tile_max=256,
                    row_tile_max=512):
    """Full encoder stack.  x: (B, S, D) f32, prepped_layers from
    prepare_encoder_params (weights already transposed / folded / bf16)."""
    B, S, D = x.shape
    # cdiv-style tiling with padding (never collapses to tiny tiles)
    seq_tile = min(seq_tile_max, _round_up(S, 8))
    S_pad = _round_up(S, seq_tile)
    n_chunks = S_pad // seq_tile
    factor = 1
    for d in range(n_chunks, 0, -1):       # largest multiple of seq_tile that
        if n_chunks % d == 0 and d * seq_tile <= row_tile_max:   # divides S_pad
            factor = d
            break
    row_tile = seq_tile * factor

    if S_pad != S:
        x = jnp.pad(x, ((0, 0), (0, S_pad - S), (0, 0)))
    for prep in prepped_layers:
        x = encoder_layer_apply(x, prep, n_heads, seq_len=S,
                                seq_tile=seq_tile, row_tile=row_tile)
    if S_pad != S:
        x = x[:, :S, :]
    return x


# --------------------------------------------------------------------------
# parameter prep (host side, once) and init
# --------------------------------------------------------------------------

def prepare_layer_params(p, n_heads):
    """Transpose to (in, out), fold 1/sqrt(dh) into Wq/bq, per-head Wo, bf16."""
    D = p["wo"].shape[0]
    dh = D // n_heads
    scale = 1.0 / math.sqrt(dh)
    col_scale = jnp.concatenate(
        [jnp.full((D,), scale, jnp.float32), jnp.ones((2 * D,), jnp.float32)])
    wqkv_t = jnp.transpose(p["wqkv"]) * col_scale[None, :]        # (D, 3D)
    bqkv = p["bqkv"] * col_scale[None, :]                         # (1, 3D)
    wo_h = jnp.transpose(p["wo"]).reshape(n_heads, dh, D)         # (H, dh, D)
    return dict(
        g1=p["g1"], b1=p["b1"],
        wqkv_t=wqkv_t.astype(jnp.bfloat16), bqkv=bqkv,
        wo_h=wo_h.astype(jnp.bfloat16), bo=p["bo"],
        g2=p["g2"], b2=p["b2"],
        w1_t=jnp.transpose(p["w1"]).astype(jnp.bfloat16), fb1=p["fb1"],
        w2_t=jnp.transpose(p["w2"]).astype(jnp.bfloat16), fb2=p["fb2"],
    )


def prepare_encoder_params(layer_params, n_heads):
    """One-time prep, hoisted out of the jitted forward."""
    _check_buffered_support()     # probe Buffered(1) support outside any trace
    return [prepare_layer_params(p, n_heads) for p in layer_params]


def init_encoder_params(key, num_layers, d_model, n_heads, d_ff):
    layers = []
    for _ in range(num_layers):
        key, *ks = jax.random.split(key, 7)
        p = dict(
            g1=jnp.ones((1, d_model), jnp.float32),
            b1=jnp.zeros((1, d_model), jnp.float32),
            wqkv=0.05 * jax.random.normal(ks[0], (3 * d_model, d_model),
                                          jnp.float32),
            bqkv=0.05 * jax.random.normal(ks[1], (1, 3 * d_model), jnp.float32),
            wo=0.05 * jax.random.normal(ks[2], (d_model, d_model), jnp.float32),
            bo=jnp.zeros((1, d_model), jnp.float32),
            g2=jnp.ones((1, d_model), jnp.float32),
            b2=jnp.zeros((1, d_model), jnp.float32),
            w1=0.05 * jax.random.normal(ks[3], (d_ff, d_model), jnp.float32),
            fb1=0.05 * jax.random.normal(ks[4], (1, d_ff), jnp.float32),
            w2=0.05 * jax.random.normal(ks[5], (d_model, d_ff), jnp.float32),
            fb2=jnp.zeros((1, d_model), jnp.float32),
        )
        layers.append(p)
    return layers


# --------------------------------------------------------------------------
# pure-JAX reference (mirrors the kernel's mixed precision)
# --------------------------------------------------------------------------

def _encoder_layer_ref(x, prep, n_heads):
    B, S, D = x.shape
    H = n_heads
    dh = D // H
    xn = _layer_norm(x, prep["g1"], prep["b1"]).astype(jnp.bfloat16)
    qkv = jnp.einsum("bsd,de->bse", xn, prep["wqkv_t"],
                     preferred_element_type=jnp.float32) + prep["bqkv"]
    q = qkv[..., :D].astype(jnp.bfloat16)
    k = qkv[..., D:2 * D].astype(jnp.bfloat16)
    v = qkv[..., 2 * D:].astype(jnp.bfloat16)
    qh = q.reshape(B, S, H, dh).transpose(0, 2, 1, 3)
    kh = k.reshape(B, S, H, dh).transpose(0, 2, 1, 3)
    vh = v.reshape(B, S, H, dh).transpose(0, 2, 1, 3)
    s = jnp.einsum("bhqd,bhkd->bhqk", qh, kh, preferred_element_type=jnp.float32)
    s = s - jnp.max(s, axis=-1, keepdims=True)
    p = jnp.exp(s)
    l = jnp.sum(p, axis=-1, keepdims=True)
    ctx = jnp.einsum("bhqk,bhkd->bhqd", p.astype(jnp.bfloat16), vh,
                     preferred_element_type=jnp.float32) / l
    ctx = ctx.transpose(0, 2, 1, 3).reshape(B, S, D).astype(jnp.bfloat16)
    wo_t = prep["wo_h"].reshape(D, D)
    attn = jnp.einsum("bsd,de->bse", ctx, wo_t,
                      preferred_element_type=jnp.float32) + prep["bo"]
    x1 = x + attn
    xn2 = _layer_norm(x1, prep["g2"], prep["b2"]).astype(jnp.bfloat16)
    h = jnp.einsum("bsd,df->bsf", xn2, prep["w1_t"],
                   preferred_element_type=jnp.float32) + prep["fb1"]
    h = _gelu_exact(h).astype(jnp.bfloat16)
    ffn = jnp.einsum("bsf,fd->bsd", h, prep["w2_t"],
                     preferred_element_type=jnp.float32) + prep["fb2"]
    return x1 + ffn


def encoder_ref(x, prepped_layers, n_heads):
    for prep in prepped_layers:
        x = _encoder_layer_ref(x, prep, n_heads)
    return x


# --------------------------------------------------------------------------
# main
# --------------------------------------------------------------------------

if __name__ == "__main__":
    B, S = 2, 8
    d_model, n_heads, d_ff, num_layers = 32, 4, 64, 2

    key = jax.random.PRNGKey(0)
    key, xkey = jax.random.split(key)
    src = jax.random.normal(xkey, (B, S, d_model), jnp.float32)

    raw_params = init_encoder_params(key, num_layers, d_model, n_heads, d_ff)
    prepped = prepare_encoder_params(raw_params, n_heads)   # hoisted, once

    fwd = jax.jit(functools.partial(encoder_forward, n_heads=n_heads))
    out = jax.block_until_ready(fwd(src, prepped))

    ref = encoder_ref(src, prepped, n_heads)
    assert out.shape == (B, S, d_model)
    assert bool(jnp.all(jnp.isfinite(out)))
    assert bool(jnp.allclose(out, ref, rtol=2e-3, atol=2e-3)), \
        "mismatch vs reference"

    print("KERNEL_OK")
</pallas_src>

<mosaic_0001>
module attributes {stable_mosaic.version = 11 : i64} {
  func.func @k(%arg0: i32, %arg1: memref<8x128xf32, #tpu.memory_space<vmem>>, %arg2: memref<8x128xf32, #tpu.memory_space<vmem>>) attributes {dimension_semantics = [#tpu.dimension_semantics<arbitrary>], iteration_bounds = array<i64: 1>, scalar_prefetch = 0 : i64, scratch_operands = 0 : i64, tpu.core_type = #tpu.core_type<tc>, window_params = [{pipeline_mode = #tpu.pipeline_mode<synchronous>, transform_indices = @transform_0, window_bounds = array<i64: 8, 128>}, {pipeline_mode = #tpu.pipeline_mode<synchronous>, transform_indices = @transform_1, window_bounds = array<i64: 8, 128>}]} {
    %c0 = arith.constant 0 : index
    %c0_0 = arith.constant 0 : index
    %0 = vector.load %arg1[%c0, %c0_0] : memref<8x128xf32, #tpu.memory_space<vmem>>, vector<8x128xf32>
    %cst = arith.constant 1.000000e+00 : f32
    %1 = vector.broadcast %cst : f32 to vector<8x128xf32>
    %2 = arith.addf %0, %1 : vector<8x128xf32>
    %c0_1 = arith.constant 0 : index
    %c0_2 = arith.constant 0 : index
    %3 = vector.load %arg2[%c0_1, %c0_2] : memref<8x128xf32, #tpu.memory_space<vmem>>, vector<8x128xf32>
    tpu.vector_store %arg2[%c0_1, %c0_2], %2 {strides = array<i32>} : memref<8x128xf32, #tpu.memory_space<vmem>>, vector<8x128xf32>,
    return
  }
  func.func @transform_0(%arg0: i32) -> (i32, i32) {
    %c0_i32 = arith.constant 0 : i32
    %c0_i32_0 = arith.constant 0 : i32
    %c0_i32_1 = arith.constant 0 : i32
    return %c0_i32, %c0_i32_0 : i32, i32
  }
  func.func @transform_1(%arg0: i32) -> (i32, i32) {
    %c0_i32 = arith.constant 0 : i32
    %c0_i32_0 = arith.constant 0 : i32
    %c0_i32_1 = arith.constant 0 : i32
    return %c0_i32, %c0_i32_0 : i32, i32
  }
}

module attributes {stable_mosaic.version = 11 : i64} {
  func.func @_ffn_kernel(%arg0: i32, %arg1: i32, %arg2: memref<1x8x32xf32, #tpu.memory_space<vmem>>, %arg3: memref<1x32xf32, #tpu.memory_space<vmem>>, %arg4: memref<1x32xf32, #tpu.memory_space<vmem>>, %arg5: memref<32x64xbf16, #tpu.memory_space<vmem>>, %arg6: memref<1x64xf32, #tpu.memory_space<vmem>>, %arg7: memref<64x32xbf16, #tpu.memory_space<vmem>>, %arg8: memref<1x32xf32, #tpu.memory_space<vmem>>, %arg9: memref<1x8x32xf32, #tpu.memory_space<vmem>>) attributes {dimension_semantics = [#tpu.dimension_semantics<parallel>, #tpu.dimension_semantics<parallel>], iteration_bounds = array<i64: 2, 1>, scalar_prefetch = 0 : i64, scratch_operands = 0 : i64, tpu.core_type = #tpu.core_type<tc>, window_params = [{transform_indices = @transform_0, window_bounds = array<i64: 1, 8, 32>}, {pipeline_mode = #tpu.pipeline_mode<synchronous>, transform_indices = @transform_1, window_bounds = array<i64: 1, 32>}, {pipeline_mode = #tpu.pipeline_mode<synchronous>, transform_indices = @transform_2, window_bounds = array<i64: 1, 32>}, {pipeline_mode = #tpu.pipeline_mode<synchronous>, transform_indices = @transform_3, window_bounds = array<i64: 32, 64>}, {pipeline_mode = #tpu.pipeline_mode<synchronous>, transform_indices = @transform_4, window_bounds = array<i64: 1, 64>}, {pipeline_mode = #tpu.pipeline_mode<synchronous>, transform_indices = @transform_5, window_bounds = array<i64: 64, 32>}, {pipeline_mode = #tpu.pipeline_mode<synchronous>, transform_indices = @transform_6, window_bounds = array<i64: 1, 32>}, {transform_indices = @transform_7, window_bounds = array<i64: 1, 8, 32>}]} {
    %c0 = arith.constant 0 : index
    %c0_0 = arith.constant 0 : index
    %c0_1 = arith.constant 0 : index
    %0 = vector.load %arg2[%c0, %c0_0, %c0_1] : memref<1x8x32xf32, #tpu.memory_space<vmem>>, vector<1x8x32xf32>
    %1 = vector.shape_cast %0 : vector<1x8x32xf32> to vector<8x32xf32>
    %c0_2 = arith.constant 0 : index
    %c0_3 = arith.constant 0 : index
    %2 = vector.load %arg3[%c0_2, %c0_3] : memref<1x32xf32, #tpu.memory_space<vmem>>, vector<1x32xf32>
    %c0_4 = arith.constant 0 : index
    %c0_5 = arith.constant 0 : index
    %3 = vector.load %arg4[%c0_4, %c0_5] : memref<1x32xf32, #tpu.memory_space<vmem>>, vector<1x32xf32>
    %cst = arith.constant dense<0.000000e+00> : vector<8xf32>
    %4 = vector.multi_reduction <add>, %1, %cst [1] : vector<8x32xf32> to vector<8xf32>
    %5 = vector.shape_cast %4 : vector<8xf32> to vector<8x1xf32>
    %cst_6 = arith.constant 3.200000e+01 : f32
    %6 = vector.broadcast %cst_6 : f32 to vector<8x1xf32>
    %7 = arith.divf %5, %6 : vector<8x1xf32>
    %8 = vector.broadcast %7 : vector<8x1xf32> to vector<8x32xf32>
    %9 = arith.subf %1, %8 : vector<8x32xf32>
    %10 = arith.mulf %9, %9 : vector<8x32xf32>
    %cst_7 = arith.constant dense<0.000000e+00> : vector<8xf32>
    %11 = vector.multi_reduction <add>, %10, %cst_7 [1] : vector<8x32xf32> to vector<8xf32>
    %12 = vector.shape_cast %11 : vector<8xf32> to vector<8x1xf32>
    %cst_8 = arith.constant 3.200000e+01 : f32
    %13 = vector.broadcast %cst_8 : f32 to vector<8x1xf32>
    %14 = arith.divf %12, %13 : vector<8x1xf32>
    %15 = vector.broadcast %7 : vector<8x1xf32> to vector<8x32xf32>
    %16 = arith.subf %1, %15 : vector<8x32xf32>
    %cst_9 = arith.constant 9.99999974E-6 : f32
    %17 = vector.broadcast %cst_9 : f32 to vector<8x1xf32>
    %18 = arith.addf %14, %17 : vector<8x1xf32>
    %19 = math.rsqrt %18 : vector<8x1xf32>
    %20 = vector.broadcast %19 : vector<8x1xf32> to vector<8x32xf32>
    %21 = arith.mulf %16, %20 : vector<8x32xf32>
    %22 = vector.broadcast %2 : vector<1x32xf32> to vector<8x32xf32>
    %23 = arith.mulf %21, %22 : vector<8x32xf32>
    %24 = vector.broadcast %3 : vector<1x32xf32> to vector<8x32xf32>
    %25 = arith.addf %23, %24 : vector<8x32xf32>
    %26 = arith.truncf %25 : vector<8x32xf32> to vector<8x32xbf16>
    %c0_10 = arith.constant 0 : index
    %c0_11 = arith.constant 0 : index
    %27 = vector.load %arg5[%c0_10, %c0_11] : memref<32x64xbf16, #tpu.memory_space<vmem>>, vector<32x64xbf16>
    %cst_12 = arith.constant dense<0.000000e+00> : vector<8x64xf32>
    %28 = tpu.matmul %26, %27, %cst_12 {dimension_numbers = #tpu.dot_dimension_numbers<[1], [0], [0], [1], [0, 0, 1, 1], [], []>} : vector<8x32xbf16>, vector<32x64xbf16>, vector<8x64xf32> -> vector<8x64xf32>
    %c0_13 = arith.constant 0 : index
    %c0_14 = arith.constant 0 : index
    %29 = vector.load %arg6[%c0_13, %c0_14] : memref<1x64xf32, #tpu.memory_space<vmem>>, vector<1x64xf32>
    %30 = vector.broadcast %29 : vector<1x64xf32> to vector<8x64xf32>
    %31 = arith.addf %28, %30 : vector<8x64xf32>
    %cst_15 = arith.constant 5.000000e-01 : f32
    %32 = vector.broadcast %cst_15 : f32 to vector<8x64xf32>
    %33 = arith.mulf %32, %31 : vector<8x64xf32>
    %cst_16 = arith.constant 0.707106769 : f32
    %34 = vector.broadcast %cst_16 : f32 to vector<8x64xf32>
    %35 = arith.mulf %31, %34 : vector<8x64xf32>
    %36 = math.erf %35 : vector<8x64xf32>
    %cst_17 = arith.constant 1.000000e+00 : f32
    %37 = vector.broadcast %cst_17 : f32 to vector<8x64xf32>
    %38 = arith.addf %37, %36 : vector<8x64xf32>
    %39 = arith.mulf %33, %38 : vector<8x64xf32>
    %40 = arith.truncf %39 : vector<8x64xf32> to vector<8x64xbf16>
    %c0_18 = arith.constant 0 : index
    %c0_19 = arith.constant 0 : index
    %41 = vector.load %arg7[%c0_18, %c0_19] : memref<64x32xbf16, #tpu.memory_space<vmem>>, vector<64x32xbf16>
    %cst_20 = arith.constant dense<0.000000e+00> : vector<8x32xf32>
    %42 = tpu.matmul %40, %41, %cst_20 {dimension_numbers = #tpu.dot_dimension_numbers<[1], [0], [0], [1], [0, 0, 1, 1], [], []>} : vector<8x64xbf16>, vector<64x32xbf16>, vector<8x32xf32> -> vector<8x32xf32>
    %c0_21 = arith.constant 0 : index
    %c0_22 = arith.constant 0 : index
    %43 = vector.load %arg8[%c0_21, %c0_22] : memref<1x32xf32, #tpu.memory_space<vmem>>, vector<1x32xf32>
    %44 = vector.broadcast %43 : vector<1x32xf32> to vector<8x32xf32>
    %45 = arith.addf %42, %44 : vector<8x32xf32>
    %46 = arith.addf %1, %45 : vector<8x32xf32>
    %c0_23 = arith.constant 0 : index
    %c0_24 = arith.constant 0 : index
    %c0_25 = arith.constant 0 : index
    %47 = vector.load %arg9[%c0_23, %c0_24, %c0_25] : memref<1x8x32xf32, #tpu.memory_space<vmem>>, vector<1x8x32xf32>
    %48 = vector.shape_cast %47 : vector<1x8x32xf32> to vector<8x32xf32>
    %49 = vector.shape_cast %46 : vector<8x32xf32> to vector<1x8x32xf32>
    tpu.vector_store %arg9[%c0_23, %c0_24, %c0_25], %49 {strides = array<i32>} : memref<1x8x32xf32, #tpu.memory_space<vmem>>, vector<1x8x32xf32>,
    return
  }
  func.func @transform_0(%arg0: i32, %arg1: i32) -> (i32, i32, i32) {
    %c0_i32 = arith.constant 0 : i32
    %c0_i32_0 = arith.constant 0 : i32
    return %arg0, %arg1, %c0_i32 : i32, i32, i32
  }
  func.func @transform_1(%arg0: i32, %arg1: i32) -> (i32, i32) {
    %c0_i32 = arith.constant 0 : i32
    %c0_i32_0 = arith.constant 0 : i32
    %c0_i32_1 = arith.constant 0 : i32
    return %c0_i32, %c0_i32_0 : i32, i32
  }
  func.func @transform_2(%arg0: i32, %arg1: i32) -> (i32, i32) {
    %c0_i32 = arith.constant 0 : i32
    %c0_i32_0 = arith.constant 0 : i32
    %c0_i32_1 = arith.constant 0 : i32
    return %c0_i32, %c0_i32_0 : i32, i32
  }
  func.func @transform_3(%arg0: i32, %arg1: i32) -> (i32, i32) {
    %c0_i32 = arith.constant 0 : i32
    %c0_i32_0 = arith.constant 0 : i32
    %c0_i32_1 = arith.constant 0 : i32
    return %c0_i32, %c0_i32_0 : i32, i32
  }
  func.func @transform_4(%arg0: i32, %arg1: i32) -> (i32, i32) {
    %c0_i32 = arith.constant 0 : i32
    %c0_i32_0 = arith.constant 0 : i32
    %c0_i32_1 = arith.constant 0 : i32
    return %c0_i32, %c0_i32_0 : i32, i32
  }
  func.func @transform_5(%arg0: i32, %arg1: i32) -> (i32, i32) {
    %c0_i32 = arith.constant 0 : i32
    %c0_i32_0 = arith.constant 0 : i32
    %c0_i32_1 = arith.constant 0 : i32
    return %c0_i32, %c0_i32_0 : i32, i32
  }
  func.func @transform_6(%arg0: i32, %arg1: i32) -> (i32, i32) {
    %c0_i32 = arith.constant 0 : i32
    %c0_i32_0 = arith.constant 0 : i32
    %c0_i32_1 = arith.constant 0 : i32
    return %c0_i32, %c0_i32_0 : i32, i32
  }
  func.func @transform_7(%arg0: i32, %arg1: i32) -> (i32, i32, i32) {
    %c0_i32 = arith.constant 0 : i32
    %c0_i32_0 = arith.constant 0 : i32
    return %arg0, %arg1, %c0_i32 : i32, i32, i32
  }
}

module attributes {stable_mosaic.version = 11 : i64} {
  func.func @_ln_qkv_kernel(%arg0: i32, %arg1: i32, %arg2: memref<1x8x32xf32, #tpu.memory_space<vmem>>, %arg3: memref<1x32xf32, #tpu.memory_space<vmem>>, %arg4: memref<1x32xf32, #tpu.memory_space<vmem>>, %arg5: memref<32x96xbf16, #tpu.memory_space<vmem>>, %arg6: memref<1x96xf32, #tpu.memory_space<vmem>>, %arg7: memref<1x8x32xbf16, #tpu.memory_space<vmem>>, %arg8: memref<1x8x32xbf16, #tpu.memory_space<vmem>>, %arg9: memref<1x8x32xbf16, #tpu.memory_space<vmem>>) attributes {dimension_semantics = [#tpu.dimension_semantics<parallel>, #tpu.dimension_semantics<parallel>], iteration_bounds = array<i64: 2, 1>, scalar_prefetch = 0 : i64, scratch_operands = 0 : i64, tpu.core_type = #tpu.core_type<tc>, window_params = [{transform_indices = @transform_0, window_bounds = array<i64: 1, 8, 32>}, {pipeline_mode = #tpu.pipeline_mode<synchronous>, transform_indices = @transform_1, window_bounds = array<i64: 1, 32>}, {pipeline_mode = #tpu.pipeline_mode<synchronous>, transform_indices = @transform_2, window_bounds = array<i64: 1, 32>}, {pipeline_mode = #tpu.pipeline_mode<synchronous>, transform_indices = @transform_3, window_bounds = array<i64: 32, 96>}, {pipeline_mode = #tpu.pipeline_mode<synchronous>, transform_indices = @transform_4, window_bounds = array<i64: 1, 96>}, {transform_indices = @transform_5, window_bounds = array<i64: 1, 8, 32>}, {transform_indices = @transform_6, window_bounds = array<i64: 1, 8, 32>}, {transform_indices = @transform_7, window_bounds = array<i64: 1, 8, 32>}]} {
    %c0 = arith.constant 0 : index
    %c0_0 = arith.constant 0 : index
    %c0_1 = arith.constant 0 : index
    %0 = vector.load %arg2[%c0, %c0_0, %c0_1] : memref<1x8x32xf32, #tpu.memory_space<vmem>>, vector<1x8x32xf32>
    %1 = vector.shape_cast %0 : vector<1x8x32xf32> to vector<8x32xf32>
    %c0_2 = arith.constant 0 : index
    %c0_3 = arith.constant 0 : index
    %2 = vector.load %arg3[%c0_2, %c0_3] : memref<1x32xf32, #tpu.memory_space<vmem>>, vector<1x32xf32>
    %c0_4 = arith.constant 0 : index
    %c0_5 = arith.constant 0 : index
    %3 = vector.load %arg4[%c0_4, %c0_5] : memref<1x32xf32, #tpu.memory_space<vmem>>, vector<1x32xf32>
    %cst = arith.constant dense<0.000000e+00> : vector<8xf32>
    %4 = vector.multi_reduction <add>, %1, %cst [1] : vector<8x32xf32> to vector<8xf32>
    %5 = vector.shape_cast %4 : vector<8xf32> to vector<8x1xf32>
    %cst_6 = arith.constant 3.200000e+01 : f32
    %6 = vector.broadcast %cst_6 : f32 to vector<8x1xf32>
    %7 = arith.divf %5, %6 : vector<8x1xf32>
    %8 = vector.broadcast %7 : vector<8x1xf32> to vector<8x32xf32>
    %9 = arith.subf %1, %8 : vector<8x32xf32>
    %10 = arith.mulf %9, %9 : vector<8x32xf32>
    %cst_7 = arith.constant dense<0.000000e+00> : vector<8xf32>
    %11 = vector.multi_reduction <add>, %10, %cst_7 [1] : vector<8x32xf32> to vector<8xf32>
    %12 = vector.shape_cast %11 : vector<8xf32> to vector<8x1xf32>
    %cst_8 = arith.constant 3.200000e+01 : f32
    %13 = vector.broadcast %cst_8 : f32 to vector<8x1xf32>
    %14 = arith.divf %12, %13 : vector<8x1xf32>
    %15 = vector.broadcast %7 : vector<8x1xf32> to vector<8x32xf32>
    %16 = arith.subf %1, %15 : vector<8x32xf32>
    %cst_9 = arith.constant 9.99999974E-6 : f32
    %17 = vector.broadcast %cst_9 : f32 to vector<8x1xf32>
    %18 = arith.addf %14, %17 : vector<8x1xf32>
    %19 = math.rsqrt %18 : vector<8x1xf32>
    %20 = vector.broadcast %19 : vector<8x1xf32> to vector<8x32xf32>
    %21 = arith.mulf %16, %20 : vector<8x32xf32>
    %22 = vector.broadcast %2 : vector<1x32xf32> to vector<8x32xf32>
    %23 = arith.mulf %21, %22 : vector<8x32xf32>
    %24 = vector.broadcast %3 : vector<1x32xf32> to vector<8x32xf32>
    %25 = arith.addf %23, %24 : vector<8x32xf32>
    %26 = arith.truncf %25 : vector<8x32xf32> to vector<8x32xbf16>
    %c0_10 = arith.constant 0 : index
    %c0_11 = arith.constant 0 : index
    %27 = vector.load %arg5[%c0_10, %c0_11] : memref<32x96xbf16, #tpu.memory_space<vmem>>, vector<32x96xbf16>
    %cst_12 = arith.constant dense<0.000000e+00> : vector<8x96xf32>
    %28 = tpu.matmul %26, %27, %cst_12 {dimension_numbers = #tpu.dot_dimension_numbers<[1], [0], [0], [1], [0, 0, 1, 1], [], []>} : vector<8x32xbf16>, vector<32x96xbf16>, vector<8x96xf32> -> vector<8x96xf32>
    %c0_13 = arith.constant 0 : index
    %c0_14 = arith.constant 0 : index
    %29 = vector.load %arg6[%c0_13, %c0_14] : memref<1x96xf32, #tpu.memory_space<vmem>>, vector<1x96xf32>
    %30 = vector.broadcast %29 : vector<1x96xf32> to vector<8x96xf32>
    %31 = arith.addf %28, %30 : vector<8x96xf32>
    %32 = vector.extract_strided_slice %31 {offsets = [0, 0], sizes = [8, 32], strides = [1, 1]} : vector<8x96xf32> to vector<8x32xf32>
    %33 = arith.truncf %32 : vector<8x32xf32> to vector<8x32xbf16>
    %c0_15 = arith.constant 0 : index
    %c0_16 = arith.constant 0 : index
    %c0_17 = arith.constant 0 : index
    %34 = vector.load %arg7[%c0_15, %c0_16, %c0_17] : memref<1x8x32xbf16, #tpu.memory_space<vmem>>, vector<1x8x32xbf16>
    %35 = vector.shape_cast %34 : vector<1x8x32xbf16> to vector<8x32xbf16>
    %36 = vector.shape_cast %33 : vector<8x32xbf16> to vector<1x8x32xbf16>
    tpu.vector_store %arg7[%c0_15, %c0_16, %c0_17], %36 {strides = array<i32>} : memref<1x8x32xbf16, #tpu.memory_space<vmem>>, vector<1x8x32xbf16>,
    %37 = vector.extract_strided_slice %31 {offsets = [0, 32], sizes = [8, 32], strides = [1, 1]} : vector<8x96xf32> to vector<8x32xf32>
    %38 = arith.truncf %37 : vector<8x32xf32> to vector<8x32xbf16>
    %c0_18 = arith.constant 0 : index
    %c0_19 = arith.constant 0 : index
    %c0_20 = arith.constant 0 : index
    %39 = vector.load %arg8[%c0_18, %c0_19, %c0_20] : memref<1x8x32xbf16, #tpu.memory_space<vmem>>, vector<1x8x32xbf16>
    %40 = vector.shape_cast %39 : vector<1x8x32xbf16> to vector<8x32xbf16>
    %41 = vector.shape_cast %38 : vector<8x32xbf16> to vector<1x8x32xbf16>
    tpu.vector_store %arg8[%c0_18, %c0_19, %c0_20], %41 {strides = array<i32>} : memref<1x8x32xbf16, #tpu.memory_space<vmem>>, vector<1x8x32xbf16>,
    %42 = vector.extract_strided_slice %31 {offsets = [0, 64], sizes = [8, 32], strides = [1, 1]} : vector<8x96xf32> to vector<8x32xf32>
    %43 = arith.truncf %42 : vector<8x32xf32> to vector<8x32xbf16>
    %c0_21 = arith.constant 0 : index
    %c0_22 = arith.constant 0 : index
    %c0_23 = arith.constant 0 : index
    %44 = vector.load %arg9[%c0_21, %c0_22, %c0_23] : memref<1x8x32xbf16, #tpu.memory_space<vmem>>, vector<1x8x32xbf16>
    %45 = vector.shape_cast %44 : vector<1x8x32xbf16> to vector<8x32xbf16>
    %46 = vector.shape_cast %43 : vector<8x32xbf16> to vector<1x8x32xbf16>
    tpu.vector_store %arg9[%c0_21, %c0_22, %c0_23], %46 {strides = array<i32>} : memref<1x8x32xbf16, #tpu.memory_space<vmem>>, vector<1x8x32xbf16>,
    return
  }
  func.func @transform_0(%arg0: i32, %arg1: i32) -> (i32, i32, i32) {
    %c0_i32 = arith.constant 0 : i32
    %c0_i32_0 = arith.constant 0 : i32
    return %arg0, %arg1, %c0_i32 : i32, i32, i32
  }
  func.func @transform_1(%arg0: i32, %arg1: i32) -> (i32, i32) {
    %c0_i32 = arith.constant 0 : i32
    %c0_i32_0 = arith.constant 0 : i32
    %c0_i32_1 = arith.constant 0 : i32
    return %c0_i32, %c0_i32_0 : i32, i32
  }
  func.func @transform_2(%arg0: i32, %arg1: i32) -> (i32, i32) {
    %c0_i32 = arith.constant 0 : i32
    %c0_i32_0 = arith.constant 0 : i32
    %c0_i32_1 = arith.constant 0 : i32
    return %c0_i32, %c0_i32_0 : i32, i32
  }
  func.func @transform_3(%arg0: i32, %arg1: i32) -> (i32, i32) {
    %c0_i32 = arith.constant 0 : i32
    %c0_i32_0 = arith.constant 0 : i32
    %c0_i32_1 = arith.constant 0 : i32
    return %c0_i32, %c0_i32_0 : i32, i32
  }
  func.func @transform_4(%arg0: i32, %arg1: i32) -> (i32, i32) {
    %c0_i32 = arith.constant 0 : i32
    %c0_i32_0 = arith.constant 0 : i32
    %c0_i32_1 = arith.constant 0 : i32
    return %c0_i32, %c0_i32_0 : i32, i32
  }
  func.func @transform_5(%arg0: i32, %arg1: i32) -> (i32, i32, i32) {
    %c0_i32 = arith.constant 0 : i32
    %c0_i32_0 = arith.constant 0 : i32
    return %arg0, %arg1, %c0_i32 : i32, i32, i32
  }
  func.func @transform_6(%arg0: i32, %arg1: i32) -> (i32, i32, i32) {
    %c0_i32 = arith.constant 0 : i32
    %c0_i32_0 = arith.constant 0 : i32
    return %arg0, %arg1, %c0_i32 : i32, i32, i32
  }
  func.func @transform_7(%arg0: i32, %arg1: i32) -> (i32, i32, i32) {
    %c0_i32 = arith.constant 0 : i32
    %c0_i32_0 = arith.constant 0 : i32
    return %arg0, %arg1, %c0_i32 : i32, i32, i32
  }
}

module attributes {stable_mosaic.version = 11 : i64} {
  func.func @_attn_kernel(%arg0: i32, %arg1: i32, %arg2: i32, %arg3: memref<1x8x32xbf16, #tpu.memory_space<vmem>>, %arg4: memref<1x8x32xbf16, #tpu.memory_space<vmem>>, %arg5: memref<1x8x32xbf16, #tpu.memory_space<vmem>>, %arg6: memref<1x8x32xf32, #tpu.memory_space<vmem>>, %arg7: memref<4x8x32xbf16, #tpu.memory_space<vmem>>, %arg8: memref<1x32xf32, #tpu.memory_space<vmem>>, %arg9: memref<1x8x32xf32, #tpu.memory_space<vmem>>, %arg10: memref<4x8x1xf32, #tpu.memory_space<vmem>>, %arg11: memref<4x8x1xf32, #tpu.memory_space<vmem>>, %arg12: memref<4x8x8xf32, #tpu.memory_space<vmem>>) attributes {dimension_semantics = [#tpu.dimension_semantics<parallel>, #tpu.dimension_semantics<parallel>, #tpu.dimension_semantics<arbitrary>], iteration_bounds = array<i64: 2, 1, 1>, scalar_prefetch = 0 : i64, scratch_operands = 3 : i64, tpu.core_type = #tpu.core_type<tc>, window_params = [{transform_indices = @transform_0, window_bounds = array<i64: 1, 8, 32>}, {transform_indices = @transform_1, window_bounds = array<i64: 1, 8, 32>}, {transform_indices = @transform_2, window_bounds = array<i64: 1, 8, 32>}, {transform_indices = @transform_3, window_bounds = array<i64: 1, 8, 32>}, {pipeline_mode = #tpu.pipeline_mode<synchronous>, transform_indices = @transform_4, window_bounds = array<i64: 4, 8, 32>}, {pipeline_mode = #tpu.pipeline_mode<synchronous>, transform_indices = @transform_5, window_bounds = array<i64: 1, 32>}, {transform_indices = @transform_6, window_bounds = array<i64: 1, 8, 32>}]} {
    %c0_i32 = arith.constant 0 : i32
    %0 = arith.cmpi eq, %arg2, %c0_i32 : i32
    %1 = arith.extui %0 : i1 to i32
    %c0_i32_0 = arith.constant 0 : i32
    %2 = arith.cmpi ne, %1, %c0_i32_0 : i32
    scf.if %2 {
      %cst_119 = arith.constant 0xFF800000 : f32
      %162 = vector.broadcast %cst_119 : f32 to vector<4x8x1xf32>
      %c0_120 = arith.constant 0 : index
      %c0_121 = arith.constant 0 : index
      %c0_122 = arith.constant 0 : index
      %163 = vector.load %arg10[%c0_120, %c0_121, %c0_122] : memref<4x8x1xf32, #tpu.memory_space<vmem>>, vector<4x8x1xf32>
      tpu.vector_store %arg10[%c0_120, %c0_121, %c0_122], %162 {strides = array<i32>} : memref<4x8x1xf32, #tpu.memory_space<vmem>>, vector<4x8x1xf32>,
      %cst_123 = arith.constant 0.000000e+00 : f32
      %164 = vector.broadcast %cst_123 : f32 to vector<4x8x1xf32>
      %c0_124 = arith.constant 0 : index
      %c0_125 = arith.constant 0 : index
      %c0_126 = arith.constant 0 : index
      %165 = vector.load %arg11[%c0_124, %c0_125, %c0_126] : memref<4x8x1xf32, #tpu.memory_space<vmem>>, vector<4x8x1xf32>
      tpu.vector_store %arg11[%c0_124, %c0_125, %c0_126], %164 {strides = array<i32>} : memref<4x8x1xf32, #tpu.memory_space<vmem>>, vector<4x8x1xf32>,
      %cst_127 = arith.constant 0.000000e+00 : f32
      %166 = vector.broadcast %cst_127 : f32 to vector<4x8x8xf32>
      %c0_128 = arith.constant 0 : index
      %c0_129 = arith.constant 0 : index
      %c0_130 = arith.constant 0 : index
      %167 = vector.load %arg12[%c0_128, %c0_129, %c0_130] : memref<4x8x8xf32, #tpu.memory_space<vmem>>, vector<4x8x8xf32>
      tpu.vector_store %arg12[%c0_128, %c0_129, %c0_130], %166 {strides = array<i32>} : memref<4x8x8xf32, #tpu.memory_space<vmem>>, vector<4x8x8xf32>,
    } else {
    }
    %c0 = arith.constant 0 : index
    %c0_1 = arith.constant 0 : index
    %c0_2 = arith.constant 0 : index
    %3 = vector.load %arg3[%c0, %c0_1, %c0_2] : memref<1x8x32xbf16, #tpu.memory_space<vmem>>, vector<1x8x8xbf16>
    %4 = vector.shape_cast %3 : vector<1x8x8xbf16> to vector<8x8xbf16>
    %c0_3 = arith.constant 0 : index
    %c0_4 = arith.constant 0 : index
    %c0_5 = arith.constant 0 : index
    %5 = vector.load %arg4[%c0_3, %c0_4, %c0_5] : memref<1x8x32xbf16, #tpu.memory_space<vmem>>, vector<1x8x8xbf16>
    %6 = vector.shape_cast %5 : vector<1x8x8xbf16> to vector<8x8xbf16>
    %c0_6 = arith.constant 0 : index
    %c0_7 = arith.constant 0 : index
    %c0_8 = arith.constant 0 : index
    %7 = vector.load %arg5[%c0_6, %c0_7, %c0_8] : memref<1x8x32xbf16, #tpu.memory_space<vmem>>, vector<1x8x8xbf16>
    %8 = vector.shape_cast %7 : vector<1x8x8xbf16> to vector<8x8xbf16>
    %cst = arith.constant dense<0.000000e+00> : vector<8x8xf32>
    %9 = tpu.matmul %4, %6, %cst {dimension_numbers = #tpu.dot_dimension_numbers<[1], [1], [0], [0], [0, 0, 1, 0], [], []>} : vector<8x8xbf16>, vector<8x8xbf16>, vector<8x8xf32> -> vector<8x8xf32>
    %c0_9 = arith.constant 0 : index
    %c0_10 = arith.constant 0 : index
    %c0_11 = arith.constant 0 : index
    %10 = vector.load %arg10[%c0_9, %c0_10, %c0_11] : memref<4x8x1xf32, #tpu.memory_space<vmem>>, vector<1x8x1xf32>
    %11 = vector.shape_cast %10 : vector<1x8x1xf32> to vector<8x1xf32>
    %cst_12 = arith.constant dense<0xFF800000> : vector<8xf32>
    %12 = vector.multi_reduction <maximumf>, %9, %cst_12 [1] : vector<8x8xf32> to vector<8xf32>
    %13 = vector.shape_cast %12 : vector<8xf32> to vector<8x1xf32>
    %14 = arith.maximumf %11, %13 : vector<8x1xf32>
    %15 = arith.subf %11, %14 : vector<8x1xf32>
    %16 = math.exp %15 : vector<8x1xf32>
    %17 = vector.broadcast %14 : vector<8x1xf32> to vector<8x8xf32>
    %18 = arith.subf %9, %17 : vector<8x8xf32>
    %19 = math.exp %18 : vector<8x8xf32>
    %c0_13 = arith.constant 0 : index
    %c0_14 = arith.constant 0 : index
    %c0_15 = arith.constant 0 : index
    %20 = vector.load %arg11[%c0_13, %c0_14, %c0_15] : memref<4x8x1xf32, #tpu.memory_space<vmem>>, vector<1x8x1xf32>
    %21 = vector.shape_cast %20 : vector<1x8x1xf32> to vector<8x1xf32>
    %22 = arith.mulf %16, %21 : vector<8x1xf32>
    %cst_16 = arith.constant dense<0.000000e+00> : vector<8xf32>
    %23 = vector.multi_reduction <add>, %19, %cst_16 [1] : vector<8x8xf32> to vector<8xf32>
    %24 = vector.shape_cast %23 : vector<8xf32> to vector<8x1xf32>
    %25 = arith.addf %22, %24 : vector<8x1xf32>
    %c0_17 = arith.constant 0 : index
    %c0_18 = arith.constant 0 : index
    %c0_19 = arith.constant 0 : index
    %26 = vector.load %arg11[%c0_17, %c0_18, %c0_19] : memref<4x8x1xf32, #tpu.memory_space<vmem>>, vector<1x8x1xf32>
    %27 = vector.shape_cast %26 : vector<1x8x1xf32> to vector<8x1xf32>
    %28 = vector.shape_cast %25 : vector<8x1xf32> to vector<1x8x1xf32>
    tpu.vector_store %arg11[%c0_17, %c0_18, %c0_19], %28 {strides = array<i32>} : memref<4x8x1xf32, #tpu.memory_space<vmem>>, vector<1x8x1xf32>,
    %c0_20 = arith.constant 0 : index
    %c0_21 = arith.constant 0 : index
    %c0_22 = arith.constant 0 : index
    %29 = vector.load %arg12[%c0_20, %c0_21, %c0_22] : memref<4x8x8xf32, #tpu.memory_space<vmem>>, vector<1x8x8xf32>
    %30 = vector.shape_cast %29 : vector<1x8x8xf32> to vector<8x8xf32>
    %31 = vector.broadcast %16 : vector<8x1xf32> to vector<8x8xf32>
    %32 = arith.mulf %31, %30 : vector<8x8xf32>
    %33 = arith.truncf %19 : vector<8x8xf32> to vector<8x8xbf16>
    %cst_23 = arith.constant dense<0.000000e+00> : vector<8x8xf32>
    %34 = tpu.matmul %33, %8, %cst_23 {dimension_numbers = #tpu.dot_dimension_numbers<[1], [0], [0], [1], [0, 0, 1, 1], [], []>} : vector<8x8xbf16>, vector<8x8xbf16>, vector<8x8xf32> -> vector<8x8xf32>
    %35 = arith.addf %32, %34 : vector<8x8xf32>
    %c0_24 = arith.constant 0 : index
    %c0_25 = arith.constant 0 : index
    %c0_26 = arith.constant 0 : index
    %36 = vector.load %arg12[%c0_24, %c0_25, %c0_26] : memref<4x8x8xf32, #tpu.memory_space<vmem>>, vector<1x8x8xf32>
    %37 = vector.shape_cast %36 : vector<1x8x8xf32> to vector<8x8xf32>
    %38 = vector.shape_cast %35 : vector<8x8xf32> to vector<1x8x8xf32>
    tpu.vector_store %arg12[%c0_24, %c0_25, %c0_26], %38 {strides = array<i32>} : memref<4x8x8xf32, #tpu.memory_space<vmem>>, vector<1x8x8xf32>,
    %c0_27 = arith.constant 0 : index
    %c0_28 = arith.constant 0 : index
    %c0_29 = arith.constant 0 : index
    %39 = vector.load %arg10[%c0_27, %c0_28, %c0_29] : memref<4x8x1xf32, #tpu.memory_space<vmem>>, vector<1x8x1xf32>
    %40 = vector.shape_cast %39 : vector<1x8x1xf32> to vector<8x1xf32>
    %41 = vector.shape_cast %14 : vector<8x1xf32> to vector<1x8x1xf32>
    tpu.vector_store %arg10[%c0_27, %c0_28, %c0_29], %41 {strides = array<i32>} : memref<4x8x1xf32, #tpu.memory_space<vmem>>, vector<1x8x1xf32>,
    %c0_30 = arith.constant 0 : index
    %c0_31 = arith.constant 0 : index
    %c8 = arith.constant 8 : index
    %42 = vector.load %arg3[%c0_30, %c0_31, %c8] : memref<1x8x32xbf16, #tpu.memory_space<vmem>>, vector<1x8x8xbf16>
    %43 = vector.shape_cast %42 : vector<1x8x8xbf16> to vector<8x8xbf16>
    %c0_32 = arith.constant 0 : index
    %c0_33 = arith.constant 0 : index
    %c8_34 = arith.constant 8 : index
    %44 = vector.load %arg4[%c0_32, %c0_33, %c8_34] : memref<1x8x32xbf16, #tpu.memory_space<vmem>>, vector<1x8x8xbf16>
    %45 = vector.shape_cast %44 : vector<1x8x8xbf16> to vector<8x8xbf16>
    %c0_35 = arith.constant 0 : index
    %c0_36 = arith.constant 0 : index
    %c8_37 = arith.constant 8 : index
    %46 = vector.load %arg5[%c0_35, %c0_36, %c8_37] : memref<1x8x32xbf16, #tpu.memory_space<vmem>>, vector<1x8x8xbf16>
    %47 = vector.shape_cast %46 : vector<1x8x8xbf16> to vector<8x8xbf16>
    %cst_38 = arith.constant dense<0.000000e+00> : vector<8x8xf32>
    %48 = tpu.matmul %43, %45, %cst_38 {dimension_numbers = #tpu.dot_dimension_numbers<[1], [1], [0], [0], [0, 0, 1, 0], [], []>} : vector<8x8xbf16>, vector<8x8xbf16>, vector<8x8xf32> -> vector<8x8xf32>
    %c1 = arith.constant 1 : index
    %c0_39 = arith.constant 0 : index
    %c0_40 = arith.constant 0 : index
    %49 = vector.load %arg10[%c1, %c0_39, %c0_40] : memref<4x8x1xf32, #tpu.memory_space<vmem>>, vector<1x8x1xf32>
    %50 = vector.shape_cast %49 : vector<1x8x1xf32> to vector<8x1xf32>
    %cst_41 = arith.constant dense<0xFF800000> : vector<8xf32>
    %51 = vector.multi_reduction <maximumf>, %48, %cst_41 [1] : vector<8x8xf32> to vector<8xf32>
    %52 = vector.shape_cast %51 : vector<8xf32> to vector<8x1xf32>
    %53 = arith.maximumf %50, %52 : vector<8x1xf32>
    %54 = arith.subf %50, %53 : vector<8x1xf32>
    %55 = math.exp %54 : vector<8x1xf32>
    %56 = vector.broadcast %53 : vector<8x1xf32> to vector<8x8xf32>
    %57 = arith.subf %48, %56 : vector<8x8xf32>
    %58 = math.exp %57 : vector<8x8xf32>
    %c1_42 = arith.constant 1 : index
    %c0_43 = arith.constant 0 : index
    %c0_44 = arith.constant 0 : index
    %59 = vector.load %arg11[%c1_42, %c0_43, %c0_44] : memref<4x8x1xf32, #tpu.memory_space<vmem>>, vector<1x8x1xf32>
    %60 = vector.shape_cast %59 : vector<1x8x1xf32> to vector<8x1xf32>
    %61 = arith.mulf %55, %60 : vector<8x1xf32>
    %cst_45 = arith.constant dense<0.000000e+00> : vector<8xf32>
    %62 = vector.multi_reduction <add>, %58, %cst_45 [1] : vector<8x8xf32> to vector<8xf32>
    %63 = vector.shape_cast %62 : vector<8xf32> to vector<8x1xf32>
    %64 = arith.addf %61, %63 : vector<8x1xf32>
    %c1_46 = arith.constant 1 : index
    %c0_47 = arith.constant 0 : index
    %c0_48 = arith.constant 0 : index
    %65 = vector.load %arg11[%c1_46, %c0_47, %c0_48] : memref<4x8x1xf32, #tpu.memory_space<vmem>>, vector<1x8x1xf32>
    %66 = vector.shape_cast %65 : vector<1x8x1xf32> to vector<8x1xf32>
    %67 = vector.shape_cast %64 : vector<8x1xf32> to vector<1x8x1xf32>
    tpu.vector_store %arg11[%c1_46, %c0_47, %c0_48], %67 {strides = array<i32>} : memref<4x8x1xf32, #tpu.memory_space<vmem>>, vector<1x8x1xf32>,
    %c1_49 = arith.constant 1 : index
    %c0_50 = arith.constant 0 : index
    %c0_51 = arith.constant 0 : index
    %68 = vector.load %arg12[%c1_49, %c0_50, %c0_51] : memref<4x8x8xf32, #tpu.memory_space<vmem>>, vector<1x8x8xf32>
    %69 = vector.shape_cast %68 : vector<1x8x8xf32> to vector<8x8xf32>
    %70 = vector.broadcast %55 : vector<8x1xf32> to vector<8x8xf32>
    %71 = arith.mulf %70, %69 : vector<8x8xf32>
    %72 = arith.truncf %58 : vector<8x8xf32> to vector<8x8xbf16>
    %cst_52 = arith.constant dense<0.000000e+00> : vector<8x8xf32>
    %73 = tpu.matmul %72, %47, %cst_52 {dimension_numbers = #tpu.dot_dimension_numbers<[1], [0], [0], [1], [0, 0, 1, 1], [], []>} : vector<8x8xbf16>, vector<8x8xbf16>, vector<8x8xf32> -> vector<8x8xf32>
    %74 = arith.addf %71, %73 : vector<8x8xf32>
    %c1_53 = arith.constant 1 : index
    %c0_54 = arith.constant 0 : index
    %c0_55 = arith.constant 0 : index
    %75 = vector.load %arg12[%c1_53, %c0_54, %c0_55] : memref<4x8x8xf32, #tpu.memory_space<vmem>>, vector<1x8x8xf32>
    %76 = vector.shape_cast %75 : vector<1x8x8xf32> to vector<8x8xf32>
    %77 = vector.shape_cast %74 : vector<8x8xf32> to vector<1x8x8xf32>
    tpu.vector_store %arg12[%c1_53, %c0_54, %c0_55], %77 {strides = array<i32>} : memref<4x8x8xf32, #tpu.memory_space<vmem>>, vector<1x8x8xf32>,
    %c1_56 = arith.constant 1 : index
    %c0_57 = arith.constant 0 : index
    %c0_58 = arith.constant 0 : index
    %78 = vector.load %arg10[%c1_56, %c0_57, %c0_58] : memref<4x8x1xf32, #tpu.memory_space<vmem>>, vector<1x8x1xf32>
    %79 = vector.shape_cast %78 : vector<1x8x1xf32> to vector<8x1xf32>
    %80 = vector.shape_cast %53 : vector<8x1xf32> to vector<1x8x1xf32>
    tpu.vector_store %arg10[%c1_56, %c0_57, %c0_58], %80 {strides = array<i32>} : memref<4x8x1xf32, #tpu.memory_space<vmem>>, vector<1x8x1xf32>,
    %c0_59 = arith.constant 0 : index
    %c0_60 = arith.constant 0 : index
    %c16 = arith.constant 16 : index
    %81 = vector.load %arg3[%c0_59, %c0_60, %c16] : memref<1x8x32xbf16, #tpu.memory_space<vmem>>, vector<1x8x8xbf16>
    %82 = vector.shape_cast %81 : vector<1x8x8xbf16> to vector<8x8xbf16>
    %c0_61 = arith.constant 0 : index
    %c0_62 = arith.constant 0 : index
    %c16_63 = arith.constant 16 : index
    %83 = vector.load %arg4[%c0_61, %c0_62, %c16_63] : memref<1x8x32xbf16, #tpu.memory_space<vmem>>, vector<1x8x8xbf16>
    %84 = vector.shape_cast %83 : vector<1x8x8xbf16> to vector<8x8xbf16>
    %c0_64 = arith.constant 0 : index
    %c0_65 = arith.constant 0 : index
    %c16_66 = arith.constant 16 : index
    %85 = vector.load %arg5[%c0_64, %c0_65, %c16_66] : memref<1x8x32xbf16, #tpu.memory_space<vmem>>, vector<1x8x8xbf16>
    %86 = vector.shape_cast %85 : vector<1x8x8xbf16> to vector<8x8xbf16>
    %cst_67 = arith.constant dense<0.000000e+00> : vector<8x8xf32>
    %87 = tpu.matmul %82, %84, %cst_67 {dimension_numbers = #tpu.dot_dimension_numbers<[1], [1], [0], [0], [0, 0, 1, 0], [], []>} : vector<8x8xbf16>, vector<8x8xbf16>, vector<8x8xf32> -> vector<8x8xf32>
    %c2 = arith.constant 2 : index
    %c0_68 = arith.constant 0 : index
    %c0_69 = arith.constant 0 : index
    %88 = vector.load %arg10[%c2, %c0_68, %c0_69] : memref<4x8x1xf32, #tpu.memory_space<vmem>>, vector<1x8x1xf32>
    %89 = vector.shape_cast %88 : vector<1x8x1xf32> to vector<8x1xf32>
    %cst_70 = arith.constant dense<0xFF800000> : vector<8xf32>
    %90 = vector.multi_reduction <maximumf>, %87, %cst_70 [1] : vector<8x8xf32> to vector<8xf32>
    %91 = vector.shape_cast %90 : vector<8xf32> to vector<8x1xf32>
    %92 = arith.maximumf %89, %91 : vector<8x1xf32>
    %93 = arith.subf %89, %92 : vector<8x1xf32>
    %94 = math.exp %93 : vector<8x1xf32>
    %95 = vector.broadcast %92 : vector<8x1xf32> to vector<8x8xf32>
    %96 = arith.subf %87, %95 : vector<8x8xf32>
    %97 = math.exp %96 : vector<8x8xf32>
    %c2_71 = arith.constant 2 : index
    %c0_72 = arith.constant 0 : index
    %c0_73 = arith.constant 0 : index
    %98 = vector.load %arg11[%c2_71, %c0_72, %c0_73] : memref<4x8x1xf32, #tpu.memory_space<vmem>>, vector<1x8x1xf32>
    %99 = vector.shape_cast %98 : vector<1x8x1xf32> to vector<8x1xf32>
    %100 = arith.mulf %94, %99 : vector<8x1xf32>
    %cst_74 = arith.constant dense<0.000000e+00> : vector<8xf32>
    %101 = vector.multi_reduction <add>, %97, %cst_74 [1] : vector<8x8xf32> to vector<8xf32>
    %102 = vector.shape_cast %101 : vector<8xf32> to vector<8x1xf32>
    %103 = arith.addf %100, %102 : vector<8x1xf32>
    %c2_75 = arith.constant 2 : index
    %c0_76 = arith.constant 0 : index
    %c0_77 = arith.constant 0 : index
    %104 = vector.load %arg11[%c2_75, %c0_76, %c0_77] : memref<4x8x1xf32, #tpu.memory_space<vmem>>, vector<1x8x1xf32>
    %105 = vector.shape_cast %104 : vector<1x8x1xf32> to vector<8x1xf32>
    %106 = vector.shape_cast %103 : vector<8x1xf32> to vector<1x8x1xf32>
    tpu.vector_store %arg11[%c2_75, %c0_76, %c0_77], %106 {strides = array<i32>} : memref<4x8x1xf32, #tpu.memory_space<vmem>>, vector<1x8x1xf32>,
    %c2_78 = arith.constant 2 : index
    %c0_79 = arith.constant 0 : index
    %c0_80 = arith.constant 0 : index
    %107 = vector.load %arg12[%c2_78, %c0_79, %c0_80] : memref<4x8x8xf32, #tpu.memory_space<vmem>>, vector<1x8x8xf32>
    %108 = vector.shape_cast %107 : vector<1x8x8xf32> to vector<8x8xf32>
    %109 = vector.broadcast %94 : vector<8x1xf32> to vector<8x8xf32>
    %110 = arith.mulf %109, %108 : vector<8x8xf32>
    %111 = arith.truncf %97 : vector<8x8xf32> to vector<8x8xbf16>
    %cst_81 = arith.constant dense<0.000000e+00> : vector<8x8xf32>
    %112 = tpu.matmul %111, %86, %cst_81 {dimension_numbers = #tpu.dot_dimension_numbers<[1], [0], [0], [1], [0, 0, 1, 1], [], []>} : vector<8x8xbf16>, vector<8x8xbf16>, vector<8x8xf32> -> vector<8x8xf32>
    %113 = arith.addf %110, %112 : vector<8x8xf32>
    %c2_82 = arith.constant 2 : index
    %c0_83 = arith.constant 0 : index
    %c0_84 = arith.constant 0 : index
    %114 = vector.load %arg12[%c2_82, %c0_83, %c0_84] : memref<4x8x8xf32, #tpu.memory_space<vmem>>, vector<1x8x8xf32>
    %115 = vector.shape_cast %114 : vector<1x8x8xf32> to vector<8x8xf32>
    %116 = vector.shape_cast %113 : vector<8x8xf32> to vector<1x8x8xf32>
    tpu.vector_store %arg12[%c2_82, %c0_83, %c0_84], %116 {strides = array<i32>} : memref<4x8x8xf32, #tpu.memory_space<vmem>>, vector<1x8x8xf32>,
    %c2_85 = arith.constant 2 : index
    %c0_86 = arith.constant 0 : index
    %c0_87 = arith.constant 0 : index
    %117 = vector.load %arg10[%c2_85, %c0_86, %c0_87] : memref<4x8x1xf32, #tpu.memory_space<vmem>>, vector<1x8x1xf32>
    %118 = vector.shape_cast %117 : vector<1x8x1xf32> to vector<8x1xf32>
    %119 = vector.shape_cast %92 : vector<8x1xf32> to vector<1x8x1xf32>
    tpu.vector_store %arg10[%c2_85, %c0_86, %c0_87], %119 {strides = array<i32>} : memref<4x8x1xf32, #tpu.memory_space<vmem>>, vector<1x8x1xf32>,
    %c0_88 = arith.constant 0 : index
    %c0_89 = arith.constant 0 : index
    %c24 = arith.constant 24 : index
    %120 = vector.load %arg3[%c0_88, %c0_89, %c24] : memref<1x8x32xbf16, #tpu.memory_space<vmem>>, vector<1x8x8xbf16>
    %121 = vector.shape_cast %120 : vector<1x8x8xbf16> to vector<8x8xbf16>
    %c0_90 = arith.constant 0 : index
    %c0_91 = arith.constant 0 : index
    %c24_92 = arith.constant 24 : index
    %122 = vector.load %arg4[%c0_90, %c0_91, %c24_92] : memref<1x8x32xbf16, #tpu.memory_space<vmem>>, vector<1x8x8xbf16>
    %123 = vector.shape_cast %122 : vector<1x8x8xbf16> to vector<8x8xbf16>
    %c0_93 = arith.constant 0 : index
    %c0_94 = arith.constant 0 : index
    %c24_95 = arith.constant 24 : index
    %124 = vector.load %arg5[%c0_93, %c0_94, %c24_95] : memref<1x8x32xbf16, #tpu.memory_space<vmem>>, vector<1x8x8xbf16>
    %125 = vector.shape_cast %124 : vector<1x8x8xbf16> to vector<8x8xbf16>
    %cst_96 = arith.constant dense<0.000000e+00> : vector<8x8xf32>
    %126 = tpu.matmul %121, %123, %cst_96 {dimension_numbers = #tpu.dot_dimension_numbers<[1], [1], [0], [0], [0, 0, 1, 0], [], []>} : vector<8x8xbf16>, vector<8x8xbf16>, vector<8x8xf32> -> vector<8x8xf32>
    %c3 = arith.constant 3 : index
    %c0_97 = arith.constant 0 : index
    %c0_98 = arith.constant 0 : index
    %127 = vector.load %arg10[%c3, %c0_97, %c0_98] : memref<4x8x1xf32, #tpu.memory_space<vmem>>, vector<1x8x1xf32>
    %128 = vector.shape_cast %127 : vector<1x8x1xf32> to vector<8x1xf32>
    %cst_99 = arith.constant dense<0xFF800000> : vector<8xf32>
    %129 = vector.multi_reduction <maximumf>, %126, %cst_99 [1] : vector<8x8xf32> to vector<8xf32>
    %130 = vector.shape_cast %129 : vector<8xf32> to vector<8x1xf32>
    %131 = arith.maximumf %128, %130 : vector<8x1xf32>
    %132 = arith.subf %128, %131 : vector<8x1xf32>
    %133 = math.exp %132 : vector<8x1xf32>
    %134 = vector.broadcast %131 : vector<8x1xf32> to vector<8x8xf32>
    %135 = arith.subf %126, %134 : vector<8x8xf32>
    %136 = math.exp %135 : vector<8x8xf32>
    %c3_100 = arith.constant 3 : index
    %c0_101 = arith.constant 0 : index
    %c0_102 = arith.constant 0 : index
    %137 = vector.load %arg11[%c3_100, %c0_101, %c0_102] : memref<4x8x1xf32, #tpu.memory_space<vmem>>, vector<1x8x1xf32>
    %138 = vector.shape_cast %137 : vector<1x8x1xf32> to vector<8x1xf32>
    %139 = arith.mulf %133, %138 : vector<8x1xf32>
    %cst_103 = arith.constant dense<0.000000e+00> : vector<8xf32>
    %140 = vector.multi_reduction <add>, %136, %cst_103 [1] : vector<8x8xf32> to vector<8xf32>
    %141 = vector.shape_cast %140 : vector<8xf32> to vector<8x1xf32>
    %142 = arith.addf %139, %141 : vector<8x1xf32>
    %c3_104 = arith.constant 3 : index
    %c0_105 = arith.constant 0 : index
    %c0_106 = arith.constant 0 : index
    %143 = vector.load %arg11[%c3_104, %c0_105, %c0_106] : memref<4x8x1xf32, #tpu.memory_space<vmem>>, vector<1x8x1xf32>
    %144 = vector.shape_cast %143 : vector<1x8x1xf32> to vector<8x1xf32>
    %145 = vector.shape_cast %142 : vector<8x1xf32> to vector<1x8x1xf32>
    tpu.vector_store %arg11[%c3_104, %c0_105, %c0_106], %145 {strides = array<i32>} : memref<4x8x1xf32, #tpu.memory_space<vmem>>, vector<1x8x1xf32>,
    %c3_107 = arith.constant 3 : index
    %c0_108 = arith.constant 0 : index
    %c0_109 = arith.constant 0 : index
    %146 = vector.load %arg12[%c3_107, %c0_108, %c0_109] : memref<4x8x8xf32, #tpu.memory_space<vmem>>, vector<1x8x8xf32>
    %147 = vector.shape_cast %146 : vector<1x8x8xf32> to vector<8x8xf32>
    %148 = vector.broadcast %133 : vector<8x1xf32> to vector<8x8xf32>
    %149 = arith.mulf %148, %147 : vector<8x8xf32>
    %150 = arith.truncf %136 : vector<8x8xf32> to vector<8x8xbf16>
    %cst_110 = arith.constant dense<0.000000e+00> : vector<8x8xf32>
    %151 = tpu.matmul %150, %125, %cst_110 {dimension_numbers = #tpu.dot_dimension_numbers<[1], [0], [0], [1], [0, 0, 1, 1], [], []>} : vector<8x8xbf16>, vector<8x8xbf16>, vector<8x8xf32> -> vector<8x8xf32>
    %152 = arith.addf %149, %151 : vector<8x8xf32>
    %c3_111 = arith.constant 3 : index
    %c0_112 = arith.constant 0 : index
    %c0_113 = arith.constant 0 : index
    %153 = vector.load %arg12[%c3_111, %c0_112, %c0_113] : memref<4x8x8xf32, #tpu.memory_space<vmem>>, vector<1x8x8xf32>
    %154 = vector.shape_cast %153 : vector<1x8x8xf32> to vector<8x8xf32>
    %155 = vector.shape_cast %152 : vector<8x8xf32> to vector<1x8x8xf32>
    tpu.vector_store %arg12[%c3_111, %c0_112, %c0_113], %155 {strides = array<i32>} : memref<4x8x8xf32, #tpu.memory_space<vmem>>, vector<1x8x8xf32>,
    %c3_114 = arith.constant 3 : index
    %c0_115 = arith.constant 0 : index
    %c0_116 = arith.constant 0 : index
    %156 = vector.load %arg10[%c3_114, %c0_115, %c0_116] : memref<4x8x1xf32, #tpu.memory_space<vmem>>, vector<1x8x1xf32>
    %157 = vector.shape_cast %156 : vector<1x8x1xf32> to vector<8x1xf32>
    %158 = vector.shape_cast %131 : vector<8x1xf32> to vector<1x8x1xf32>
    tpu.vector_store %arg10[%c3_114, %c0_115, %c0_116], %158 {strides = array<i32>} : memref<4x8x1xf32, #tpu.memory_space<vmem>>, vector<1x8x1xf32>,
    %c0_i32_117 = arith.constant 0 : i32
    %159 = arith.cmpi eq, %arg2, %c0_i32_117 : i32
    %160 = arith.extui %159 : i1 to i32
    %c0_i32_118 = arith.constant 0 : i32
    %161 = arith.cmpi ne, %160, %c0_i32_118 : i32
    scf.if %161 {
      %c0_119 = arith.constant 0 : index
      %c0_120 = arith.constant 0 : index
      %c0_121 = arith.constant 0 : index
      %162 = vector.load %arg11[%c0_119, %c0_120, %c0_121] : memref<4x8x1xf32, #tpu.memory_space<vmem>>, vector<4x8x1xf32>
      %163 = tpu.reciprocal %162 {approx = true} : vector<4x8x1xf32> -> vector<4x8x1xf32>
      %c0_122 = arith.constant 0 : index
      %c0_123 = arith.constant 0 : index
      %c0_124 = arith.constant 0 : index
      %164 = vector.load %arg12[%c0_122, %c0_123, %c0_124] : memref<4x8x8xf32, #tpu.memory_space<vmem>>, vector<1x8x8xf32>
      %165 = vector.shape_cast %164 : vector<1x8x8xf32> to vector<8x8xf32>
      %166 = vector.extract_strided_slice %163 {offsets = [0, 0, 0], sizes = [1, 8, 1], strides = [1, 1, 1]} : vector<4x8x1xf32> to vector<1x8x1xf32>
      %167 = vector.shape_cast %166 : vector<1x8x1xf32> to vector<8x1xf32>
      %168 = vector.broadcast %167 : vector<8x1xf32> to vector<8x8xf32>
      %169 = arith.mulf %165, %168 : vector<8x8xf32>
      %170 = arith.truncf %169 : vector<8x8xf32> to vector<8x8xbf16>
      %c0_125 = arith.constant 0 : index
      %c0_126 = arith.constant 0 : index
      %c0_127 = arith.constant 0 : index
      %171 = vector.load %arg7[%c0_125, %c0_126, %c0_127] : memref<4x8x32xbf16, #tpu.memory_space<vmem>>, vector<1x8x32xbf16>
      %172 = vector.shape_cast %171 : vector<1x8x32xbf16> to vector<8x32xbf16>
      %cst_128 = arith.constant dense<0.000000e+00> : vector<8x32xf32>
      %173 = tpu.matmul %170, %172, %cst_128 {dimension_numbers = #tpu.dot_dimension_numbers<[1], [0], [0], [1], [0, 0, 1, 1], [], []>} : vector<8x8xbf16>, vector<8x32xbf16>, vector<8x32xf32> -> vector<8x32xf32>
      %c1_129 = arith.constant 1 : index
      %c0_130 = arith.constant 0 : index
      %c0_131 = arith.constant 0 : index
      %174 = vector.load %arg12[%c1_129, %c0_130, %c0_131] : memref<4x8x8xf32, #tpu.memory_space<vmem>>, vector<1x8x8xf32>
      %175 = vector.shape_cast %174 : vector<1x8x8xf32> to vector<8x8xf32>
      %176 = vector.extract_strided_slice %163 {offsets = [1, 0, 0], sizes = [1, 8, 1], strides = [1, 1, 1]} : vector<4x8x1xf32> to vector<1x8x1xf32>
      %177 = vector.shape_cast %176 : vector<1x8x1xf32> to vector<8x1xf32>
      %178 = vector.broadcast %177 : vector<8x1xf32> to vector<8x8xf32>
      %179 = arith.mulf %175, %178 : vector<8x8xf32>
      %180 = arith.truncf %179 : vector<8x8xf32> to vector<8x8xbf16>
      %c1_132 = arith.constant 1 : index
      %c0_133 = arith.constant 0 : index
      %c0_134 = arith.constant 0 : index
      %181 = vector.load %arg7[%c1_132, %c0_133, %c0_134] : memref<4x8x32xbf16, #tpu.memory_space<vmem>>, vector<1x8x32xbf16>
      %182 = vector.shape_cast %181 : vector<1x8x32xbf16> to vector<8x32xbf16>
      %cst_135 = arith.constant dense<0.000000e+00> : vector<8x32xf32>
      %183 = tpu.matmul %180, %182, %cst_135 {dimension_numbers = #tpu.dot_dimension_numbers<[1], [0], [0], [1], [0, 0, 1, 1], [], []>} : vector<8x8xbf16>, vector<8x32xbf16>, vector<8x32xf32> -> vector<8x32xf32>
      %184 = arith.addf %173, %183 : vector<8x32xf32>
      %c2_136 = arith.constant 2 : index
      %c0_137 = arith.constant 0 : index
      %c0_138 = arith.constant 0 : index
      %185 = vector.load %arg12[%c2_136, %c0_137, %c0_138] : memref<4x8x8xf32, #tpu.memory_space<vmem>>, vector<1x8x8xf32>
      %186 = vector.shape_cast %185 : vector<1x8x8xf32> to vector<8x8xf32>
      %187 = vector.extract_strided_slice %163 {offsets = [2, 0, 0], sizes = [1, 8, 1], strides = [1, 1, 1]} : vector<4x8x1xf32> to vector<1x8x1xf32>
      %188 = vector.shape_cast %187 : vector<1x8x1xf32> to vector<8x1xf32>
      %189 = vector.broadcast %188 : vector<8x1xf32> to vector<8x8xf32>
      %190 = arith.mulf %186, %189 : vector<8x8xf32>
      %191 = arith.truncf %190 : vector<8x8xf32> to vector<8x8xbf16>
      %c2_139 = arith.constant 2 : index
      %c0_140 = arith.constant 0 : index
      %c0_141 = arith.constant 0 : index
      %192 = vector.load %arg7[%c2_139, %c0_140, %c0_141] : memref<4x8x32xbf16, #tpu.memory_space<vmem>>, vector<1x8x32xbf16>
      %193 = vector.shape_cast %192 : vector<1x8x32xbf16> to vector<8x32xbf16>
      %cst_142 = arith.constant dense<0.000000e+00> : vector<8x32xf32>
      %194 = tpu.matmul %191, %193, %cst_142 {dimension_numbers = #tpu.dot_dimension_numbers<[1], [0], [0], [1], [0, 0, 1, 1], [], []>} : vector<8x8xbf16>, vector<8x32xbf16>, vector<8x32xf32> -> vector<8x32xf32>
      %195 = arith.addf %184, %194 : vector<8x32xf32>
      %c3_143 = arith.constant 3 : index
      %c0_144 = arith.constant 0 : index
      %c0_145 = arith.constant 0 : index
      %196 = vector.load %arg12[%c3_143, %c0_144, %c0_145] : memref<4x8x8xf32, #tpu.memory_space<vmem>>, vector<1x8x8xf32>
      %197 = vector.shape_cast %196 : vector<1x8x8xf32> to vector<8x8xf32>
      %198 = vector.extract_strided_slice %163 {offsets = [3, 0, 0], sizes = [1, 8, 1], strides = [1, 1, 1]} : vector<4x8x1xf32> to vector<1x8x1xf32>
      %199 = vector.shape_cast %198 : vector<1x8x1xf32> to vector<8x1xf32>
      %200 = vector.broadcast %199 : vector<8x1xf32> to vector<8x8xf32>
      %201 = arith.mulf %197, %200 : vector<8x8xf32>
      %202 = arith.truncf %201 : vector<8x8xf32> to vector<8x8xbf16>
      %c3_146 = arith.constant 3 : index
      %c0_147 = arith.constant 0 : index
      %c0_148 = arith.constant 0 : index
      %203 = vector.load %arg7[%c3_146, %c0_147, %c0_148] : memref<4x8x32xbf16, #tpu.memory_space<vmem>>, vector<1x8x32xbf16>
      %204 = vector.shape_cast %203 : vector<1x8x32xbf16> to vector<8x32xbf16>
      %cst_149 = arith.constant dense<0.000000e+00> : vector<8x32xf32>
      %205 = tpu.matmul %202, %204, %cst_149 {dimension_numbers = #tpu.dot_dimension_numbers<[1], [0], [0], [1], [0, 0, 1, 1], [], []>} : vector<8x8xbf16>, vector<8x32xbf16>, vector<8x32xf32> -> vector<8x32xf32>
      %206 = arith.addf %195, %205 : vector<8x32xf32>
      %c0_150 = arith.constant 0 : index
      %c0_151 = arith.constant 0 : index
      %c0_152 = arith.constant 0 : index
      %207 = vector.load %arg6[%c0_150, %c0_151, %c0_152] : memref<1x8x32xf32, #tpu.memory_space<vmem>>, vector<1x8x32xf32>
      %208 = vector.shape_cast %207 : vector<1x8x32xf32> to vector<8x32xf32>
      %209 = arith.addf %208, %206 : vector<8x32xf32>
      %c0_153 = arith.constant 0 : index
      %c0_154 = arith.constant 0 : index
      %210 = vector.load %arg8[%c0_153, %c0_154] : memref<1x32xf32, #tpu.memory_space<vmem>>, vector<1x32xf32>
      %211 = vector.broadcast %210 : vector<1x32xf32> to vector<8x32xf32>
      %212 = arith.addf %209, %211 : vector<8x32xf32>
      %c0_155 = arith.constant 0 : index
      %c0_156 = arith.constant 0 : index
      %c0_157 = arith.constant 0 : index
      %213 = vector.load %arg9[%c0_155, %c0_156, %c0_157] : memref<1x8x32xf32, #tpu.memory_space<vmem>>, vector<1x8x32xf32>
      %214 = vector.shape_cast %213 : vector<1x8x32xf32> to vector<8x32xf32>
      %215 = vector.shape_cast %212 : vector<8x32xf32> to vector<1x8x32xf32>
      tpu.vector_store %arg9[%c0_155, %c0_156, %c0_157], %215 {strides = array<i32>} : memref<1x8x32xf32, #tpu.memory_space<vmem>>, vector<1x8x32xf32>,
    } else {
    }
    return
  }
  func.func @transform_0(%arg0: i32, %arg1: i32, %arg2: i32) -> (i32, i32, i32) {
    %c0_i32 = arith.constant 0 : i32
    %c0_i32_0 = arith.constant 0 : i32
    return %arg0, %arg1, %c0_i32 : i32, i32, i32
  }
  func.func @transform_1(%arg0: i32, %arg1: i32, %arg2: i32) -> (i32, i32, i32) {
    %c0_i32 = arith.constant 0 : i32
    %c0_i32_0 = arith.constant 0 : i32
    return %arg0, %arg2, %c0_i32 : i32, i32, i32
  }
  func.func @transform_2(%arg0: i32, %arg1: i32, %arg2: i32) -> (i32, i32, i32) {
    %c0_i32 = arith.constant 0 : i32
    %c0_i32_0 = arith.constant 0 : i32
    return %arg0, %arg2, %c0_i32 : i32, i32, i32
  }
  func.func @transform_3(%arg0: i32, %arg1: i32, %arg2: i32) -> (i32, i32, i32) {
    %c0_i32 = arith.constant 0 : i32
    %c0_i32_0 = arith.constant 0 : i32
    return %arg0, %arg1, %c0_i32 : i32, i32, i32
  }
  func.func @transform_4(%arg0: i32, %arg1: i32, %arg2: i32) -> (i32, i32, i32) {
    %c0_i32 = arith.constant 0 : i32
    %c0_i32_0 = arith.constant 0 : i32
    %c0_i32_1 = arith.constant 0 : i32
    %c0_i32_2 = arith.constant 0 : i32
    return %c0_i32, %c0_i32_0, %c0_i32_1 : i32, i32, i32
  }
  func.func @transform_5(%arg0: i32, %arg1: i32, %arg2: i32) -> (i32, i32) {
    %c0_i32 = arith.constant 0 : i32
    %c0_i32_0 = arith.constant 0 : i32
    %c0_i32_1 = arith.constant 0 : i32
    return %c0_i32, %c0_i32_0 : i32, i32
  }
  func.func @transform_6(%arg0: i32, %arg1: i32, %arg2: i32) -> (i32, i32, i32) {
    %c0_i32 = arith.constant 0 : i32
    %c0_i32_0 = arith.constant 0 : i32
    return %arg0, %arg1, %c0_i32 : i32, i32, i32
  }
}

module attributes {stable_mosaic.version = 11 : i64} {
  func.func @_ln_qkv_kernel(%arg0: i32, %arg1: i32, %arg2: memref<1x8x32xf32, #tpu.memory_space<vmem>>, %arg3: memref<1x32xf32, #tpu.memory_space<vmem>>, %arg4: memref<1x32xf32, #tpu.memory_space<vmem>>, %arg5: memref<32x96xbf16, #tpu.memory_space<vmem>>, %arg6: memref<1x96xf32, #tpu.memory_space<vmem>>, %arg7: memref<1x8x32xbf16, #tpu.memory_space<vmem>>, %arg8: memref<1x8x32xbf16, #tpu.memory_space<vmem>>, %arg9: memref<1x8x32xbf16, #tpu.memory_space<vmem>>) attributes {dimension_semantics = [#tpu.dimension_semantics<parallel>, #tpu.dimension_semantics<parallel>], iteration_bounds = array<i64: 2, 1>, scalar_prefetch = 0 : i64, scratch_operands = 0 : i64, tpu.core_type = #tpu.core_type<tc>, window_params = [{transform_indices = @transform_0, window_bounds = array<i64: 1, 8, 32>}, {pipeline_mode = #tpu.pipeline_mode<synchronous>, transform_indices = @transform_1, window_bounds = array<i64: 1, 32>}, {pipeline_mode = #tpu.pipeline_mode<synchronous>, transform_indices = @transform_2, window_bounds = array<i64: 1, 32>}, {pipeline_mode = #tpu.pipeline_mode<synchronous>, transform_indices = @transform_3, window_bounds = array<i64: 32, 96>}, {pipeline_mode = #tpu.pipeline_mode<synchronous>, transform_indices = @transform_4, window_bounds = array<i64: 1, 96>}, {transform_indices = @transform_5, window_bounds = array<i64: 1, 8, 32>}, {transform_indices = @transform_6, window_bounds = array<i64: 1, 8, 32>}, {transform_indices = @transform_7, window_bounds = array<i64: 1, 8, 32>}]} {
    %c0 = arith.constant 0 : index
    %c0_0 = arith.constant 0 : index
    %c0_1 = arith.constant 0 : index
    %0 = vector.load %arg2[%c0, %c0_0, %c0_1] : memref<1x8x32xf32, #tpu.memory_space<vmem>>, vector<1x8x32xf32>
    %1 = vector.shape_cast %0 : vector<1x8x32xf32> to vector<8x32xf32>
    %c0_2 = arith.constant 0 : index
    %c0_3 = arith.constant 0 : index
    %2 = vector.load %arg3[%c0_2, %c0_3] : memref<1x32xf32, #tpu.memory_space<vmem>>, vector<1x32xf32>
    %c0_4 = arith.constant 0 : index
    %c0_5 = arith.constant 0 : index
    %3 = vector.load %arg4[%c0_4, %c0_5] : memref<1x32xf32, #tpu.memory_space<vmem>>, vector<1x32xf32>
    %cst = arith.constant dense<0.000000e+00> : vector<8xf32>
    %4 = vector.multi_reduction <add>, %1, %cst [1] : vector<8x32xf32> to vector<8xf32>
    %5 = vector.shape_cast %4 : vector<8xf32> to vector<8x1xf32>
    %cst_6 = arith.constant 3.200000e+01 : f32
    %6 = vector.broadcast %cst_6 : f32 to vector<8x1xf32>
    %7 = arith.divf %5, %6 : vector<8x1xf32>
    %8 = vector.broadcast %7 : vector<8x1xf32> to vector<8x32xf32>
    %9 = arith.subf %1, %8 : vector<8x32xf32>
    %10 = arith.mulf %9, %9 : vector<8x32xf32>
    %cst_7 = arith.constant dense<0.000000e+00> : vector<8xf32>
    %11 = vector.multi_reduction <add>, %10, %cst_7 [1] : vector<8x32xf32> to vector<8xf32>
    %12 = vector.shape_cast %11 : vector<8xf32> to vector<8x1xf32>
    %cst_8 = arith.constant 3.200000e+01 : f32
    %13 = vector.broadcast %cst_8 : f32 to vector<8x1xf32>
    %14 = arith.divf %12, %13 : vector<8x1xf32>
    %15 = vector.broadcast %7 : vector<8x1xf32> to vector<8x32xf32>
    %16 = arith.subf %1, %15 : vector<8x32xf32>
    %cst_9 = arith.constant 9.99999974E-6 : f32
    %17 = vector.broadcast %cst_9 : f32 to vector<8x1xf32>
    %18 = arith.addf %14, %17 : vector<8x1xf32>
    %19 = math.rsqrt %18 : vector<8x1xf32>
    %20 = vector.broadcast %19 : vector<8x1xf32> to vector<8x32xf32>
    %21 = arith.mulf %16, %20 : vector<8x32xf32>
    %22 = vector.broadcast %2 : vector<1x32xf32> to vector<8x32xf32>
    %23 = arith.mulf %21, %22 : vector<8x32xf32>
    %24 = vector.broadcast %3 : vector<1x32xf32> to vector<8x32xf32>
    %25 = arith.addf %23, %24 : vector<8x32xf32>
    %26 = arith.truncf %25 : vector<8x32xf32> to vector<8x32xbf16>
    %c0_10 = arith.constant 0 : index
    %c0_11 = arith.constant 0 : index
    %27 = vector.load %arg5[%c0_10, %c0_11] : memref<32x96xbf16, #tpu.memory_space<vmem>>, vector<32x96xbf16>
    %cst_12 = arith.constant dense<0.000000e+00> : vector<8x96xf32>
    %28 = tpu.matmul %26, %27, %cst_12 {dimension_numbers = #tpu.dot_dimension_numbers<[1], [0], [0], [1], [0, 0, 1, 1], [], []>} : vector<8x32xbf16>, vector<32x96xbf16>, vector<8x96xf32> -> vector<8x96xf32>
    %c0_13 = arith.constant 0 : index
    %c0_14 = arith.constant 0 : index
    %29 = vector.load %arg6[%c0_13, %c0_14] : memref<1x96xf32, #tpu.memory_space<vmem>>, vector<1x96xf32>
    %30 = vector.broadcast %29 : vector<1x96xf32> to vector<8x96xf32>
    %31 = arith.addf %28, %30 : vector<8x96xf32>
    %32 = vector.extract_strided_slice %31 {offsets = [0, 0], sizes = [8, 32], strides = [1, 1]} : vector<8x96xf32> to vector<8x32xf32>
    %33 = arith.truncf %32 : vector<8x32xf32> to vector<8x32xbf16>
    %c0_15 = arith.constant 0 : index
    %c0_16 = arith.constant 0 : index
    %c0_17 = arith.constant 0 : index
    %34 = vector.load %arg7[%c0_15, %c0_16, %c0_17] : memref<1x8x32xbf16, #tpu.memory_space<vmem>>, vector<1x8x32xbf16>
    %35 = vector.shape_cast %34 : vector<1x8x32xbf16> to vector<8x32xbf16>
    %36 = vector.shape_cast %33 : vector<8x32xbf16> to vector<1x8x32xbf16>
    tpu.vector_store %arg7[%c0_15, %c0_16, %c0_17], %36 {strides = array<i32>} : memref<1x8x32xbf16, #tpu.memory_space<vmem>>, vector<1x8x32xbf16>,
    %37 = vector.extract_strided_slice %31 {offsets = [0, 32], sizes = [8, 32], strides = [1, 1]} : vector<8x96xf32> to vector<8x32xf32>
    %38 = arith.truncf %37 : vector<8x32xf32> to vector<8x32xbf16>
    %c0_18 = arith.constant 0 : index
    %c0_19 = arith.constant 0 : index
    %c0_20 = arith.constant 0 : index
    %39 = vector.load %arg8[%c0_18, %c0_19, %c0_20] : memref<1x8x32xbf16, #tpu.memory_space<vmem>>, vector<1x8x32xbf16>
    %40 = vector.shape_cast %39 : vector<1x8x32xbf16> to vector<8x32xbf16>
    %41 = vector.shape_cast %38 : vector<8x32xbf16> to vector<1x8x32xbf16>
    tpu.vector_store %arg8[%c0_18, %c0_19, %c0_20], %41 {strides = array<i32>} : memref<1x8x32xbf16, #tpu.memory_space<vmem>>, vector<1x8x32xbf16>,
    %42 = vector.extract_strided_slice %31 {offsets = [0, 64], sizes = [8, 32], strides = [1, 1]} : vector<8x96xf32> to vector<8x32xf32>
    %43 = arith.truncf %42 : vector<8x32xf32> to vector<8x32xbf16>
    %c0_21 = arith.constant 0 : index
    %c0_22 = arith.constant 0 : index
    %c0_23 = arith.constant 0 : index
    %44 = vector.load %arg9[%c0_21, %c0_22, %c0_23] : memref<1x8x32xbf16, #tpu.memory_space<vmem>>, vector<1x8x32xbf16>
    %45 = vector.shape_cast %44 : vector<1x8x32xbf16> to vector<8x32xbf16>
    %46 = vector.shape_cast %43 : vector<8x32xbf16> to vector<1x8x32xbf16>
    tpu.vector_store %arg9[%c0_21, %c0_22, %c0_23], %46 {strides = array<i32>} : memref<1x8x32xbf16, #tpu.memory_space<vmem>>, vector<1x8x32xbf16>,
    return
  }
  func.func @transform_0(%arg0: i32, %arg1: i32) -> (i32, i32, i32) {
    %c0_i32 = arith.constant 0 : i32
    %c0_i32_0 = arith.constant 0 : i32
    return %arg0, %arg1, %c0_i32 : i32, i32, i32
  }
  func.func @transform_1(%arg0: i32, %arg1: i32) -> (i32, i32) {
    %c0_i32 = arith.constant 0 : i32
    %c0_i32_0 = arith.constant 0 : i32
    %c0_i32_1 = arith.constant 0 : i32
    return %c0_i32, %c0_i32_0 : i32, i32
  }
  func.func @transform_2(%arg0: i32, %arg1: i32) -> (i32, i32) {
    %c0_i32 = arith.constant 0 : i32
    %c0_i32_0 = arith.constant 0 : i32
    %c0_i32_1 = arith.constant 0 : i32
    return %c0_i32, %c0_i32_0 : i32, i32
  }
  func.func @transform_3(%arg0: i32, %arg1: i32) -> (i32, i32) {
    %c0_i32 = arith.constant 0 : i32
    %c0_i32_0 = arith.constant 0 : i32
    %c0_i32_1 = arith.constant 0 : i32
    return %c0_i32, %c0_i32_0 : i32, i32
  }
  func.func @transform_4(%arg0: i32, %arg1: i32) -> (i32, i32) {
    %c0_i32 = arith.constant 0 : i32
    %c0_i32_0 = arith.constant 0 : i32
    %c0_i32_1 = arith.constant 0 : i32
    return %c0_i32, %c0_i32_0 : i32, i32
  }
  func.func @transform_5(%arg0: i32, %arg1: i32) -> (i32, i32, i32) {
    %c0_i32 = arith.constant 0 : i32
    %c0_i32_0 = arith.constant 0 : i32
    return %arg0, %arg1, %c0_i32 : i32, i32, i32
  }
  func.func @transform_6(%arg0: i32, %arg1: i32) -> (i32, i32, i32) {
    %c0_i32 = arith.constant 0 : i32
    %c0_i32_0 = arith.constant 0 : i32
    return %arg0, %arg1, %c0_i32 : i32, i32, i32
  }
  func.func @transform_7(%arg0: i32, %arg1: i32) -> (i32, i32, i32) {
    %c0_i32 = arith.constant 0 : i32
    %c0_i32_0 = arith.constant 0 : i32
    return %arg0, %arg1, %c0_i32 : i32, i32, i32
  }
}

module attributes {stable_mosaic.version = 11 : i64} {
  func.func @_ffn_kernel(%arg0: i32, %arg1: i32, %arg2: memref<1x8x32xf32, #tpu.memory_space<vmem>>, %arg3: memref<1x32xf32, #tpu.memory_space<vmem>>, %arg4: memref<1x32xf32, #tpu.memory_space<vmem>>, %arg5: memref<32x64xbf16, #tpu.memory_space<vmem>>, %arg6: memref<1x64xf32, #tpu.memory_space<vmem>>, %arg7: memref<64x32xbf16, #tpu.memory_space<vmem>>, %arg8: memref<1x32xf32, #tpu.memory_space<vmem>>, %arg9: memref<1x8x32xf32, #tpu.memory_space<vmem>>) attributes {dimension_semantics = [#tpu.dimension_semantics<parallel>, #tpu.dimension_semantics<parallel>], iteration_bounds = array<i64: 2, 1>, scalar_prefetch = 0 : i64, scratch_operands = 0 : i64, tpu.core_type = #tpu.core_type<tc>, window_params = [{transform_indices = @transform_0, window_bounds = array<i64: 1, 8, 32>}, {pipeline_mode = #tpu.pipeline_mode<synchronous>, transform_indices = @transform_1, window_bounds = array<i64: 1, 32>}, {pipeline_mode = #tpu.pipeline_mode<synchronous>, transform_indices = @transform_2, window_bounds = array<i64: 1, 32>}, {pipeline_mode = #tpu.pipeline_mode<synchronous>, transform_indices = @transform_3, window_bounds = array<i64: 32, 64>}, {pipeline_mode = #tpu.pipeline_mode<synchronous>, transform_indices = @transform_4, window_bounds = array<i64: 1, 64>}, {pipeline_mode = #tpu.pipeline_mode<synchronous>, transform_indices = @transform_5, window_bounds = array<i64: 64, 32>}, {pipeline_mode = #tpu.pipeline_mode<synchronous>, transform_indices = @transform_6, window_bounds = array<i64: 1, 32>}, {transform_indices = @transform_7, window_bounds = array<i64: 1, 8, 32>}]} {
    %c0 = arith.constant 0 : index
    %c0_0 = arith.constant 0 : index
    %c0_1 = arith.constant 0 : index
    %0 = vector.load %arg2[%c0, %c0_0, %c0_1] : memref<1x8x32xf32, #tpu.memory_space<vmem>>, vector<1x8x32xf32>
    %1 = vector.shape_cast %0 : vector<1x8x32xf32> to vector<8x32xf32>
    %c0_2 = arith.constant 0 : index
    %c0_3 = arith.constant 0 : index
    %2 = vector.load %arg3[%c0_2, %c0_3] : memref<1x32xf32, #tpu.memory_space<vmem>>, vector<1x32xf32>
    %c0_4 = arith.constant 0 : index
    %c0_5 = arith.constant 0 : index
    %3 = vector.load %arg4[%c0_4, %c0_5] : memref<1x32xf32, #tpu.memory_space<vmem>>, vector<1x32xf32>
    %cst = arith.constant dense<0.000000e+00> : vector<8xf32>
    %4 = vector.multi_reduction <add>, %1, %cst [1] : vector<8x32xf32> to vector<8xf32>
    %5 = vector.shape_cast %4 : vector<8xf32> to vector<8x1xf32>
    %cst_6 = arith.constant 3.200000e+01 : f32
    %6 = vector.broadcast %cst_6 : f32 to vector<8x1xf32>
    %7 = arith.divf %5, %6 : vector<8x1xf32>
    %8 = vector.broadcast %7 : vector<8x1xf32> to vector<8x32xf32>
    %9 = arith.subf %1, %8 : vector<8x32xf32>
    %10 = arith.mulf %9, %9 : vector<8x32xf32>
    %cst_7 = arith.constant dense<0.000000e+00> : vector<8xf32>
    %11 = vector.multi_reduction <add>, %10, %cst_7 [1] : vector<8x32xf32> to vector<8xf32>
    %12 = vector.shape_cast %11 : vector<8xf32> to vector<8x1xf32>
    %cst_8 = arith.constant 3.200000e+01 : f32
    %13 = vector.broadcast %cst_8 : f32 to vector<8x1xf32>
    %14 = arith.divf %12, %13 : vector<8x1xf32>
    %15 = vector.broadcast %7 : vector<8x1xf32> to vector<8x32xf32>
    %16 = arith.subf %1, %15 : vector<8x32xf32>
    %cst_9 = arith.constant 9.99999974E-6 : f32
    %17 = vector.broadcast %cst_9 : f32 to vector<8x1xf32>
    %18 = arith.addf %14, %17 : vector<8x1xf32>
    %19 = math.rsqrt %18 : vector<8x1xf32>
    %20 = vector.broadcast %19 : vector<8x1xf32> to vector<8x32xf32>
    %21 = arith.mulf %16, %20 : vector<8x32xf32>
    %22 = vector.broadcast %2 : vector<1x32xf32> to vector<8x32xf32>
    %23 = arith.mulf %21, %22 : vector<8x32xf32>
    %24 = vector.broadcast %3 : vector<1x32xf32> to vector<8x32xf32>
    %25 = arith.addf %23, %24 : vector<8x32xf32>
    %26 = arith.truncf %25 : vector<8x32xf32> to vector<8x32xbf16>
    %c0_10 = arith.constant 0 : index
    %c0_11 = arith.constant 0 : index
    %27 = vector.load %arg5[%c0_10, %c0_11] : memref<32x64xbf16, #tpu.memory_space<vmem>>, vector<32x64xbf16>
    %cst_12 = arith.constant dense<0.000000e+00> : vector<8x64xf32>
    %28 = tpu.matmul %26, %27, %cst_12 {dimension_numbers = #tpu.dot_dimension_numbers<[1], [0], [0], [1], [0, 0, 1, 1], [], []>} : vector<8x32xbf16>, vector<32x64xbf16>, vector<8x64xf32> -> vector<8x64xf32>
    %c0_13 = arith.constant 0 : index
    %c0_14 = arith.constant 0 : index
    %29 = vector.load %arg6[%c0_13, %c0_14] : memref<1x64xf32, #tpu.memory_space<vmem>>, vector<1x64xf32>
    %30 = vector.broadcast %29 : vector<1x64xf32> to vector<8x64xf32>
    %31 = arith.addf %28, %30 : vector<8x64xf32>
    %cst_15 = arith.constant 5.000000e-01 : f32
    %32 = vector.broadcast %cst_15 : f32 to vector<8x64xf32>
    %33 = arith.mulf %32, %31 : vector<8x64xf32>
    %cst_16 = arith.constant 0.707106769 : f32
    %34 = vector.broadcast %cst_16 : f32 to vector<8x64xf32>
    %35 = arith.mulf %31, %34 : vector<8x64xf32>
    %36 = math.erf %35 : vector<8x64xf32>
    %cst_17 = arith.constant 1.000000e+00 : f32
    %37 = vector.broadcast %cst_17 : f32 to vector<8x64xf32>
    %38 = arith.addf %37, %36 : vector<8x64xf32>
    %39 = arith.mulf %33, %38 : vector<8x64xf32>
    %40 = arith.truncf %39 : vector<8x64xf32> to vector<8x64xbf16>
    %c0_18 = arith.constant 0 : index
    %c0_19 = arith.constant 0 : index
    %41 = vector.load %arg7[%c0_18, %c0_19] : memref<64x32xbf16, #tpu.memory_space<vmem>>, vector<64x32xbf16>
    %cst_20 = arith.constant dense<0.000000e+00> : vector<8x32xf32>
    %42 = tpu.matmul %40, %41, %cst_20 {dimension_numbers = #tpu.dot_dimension_numbers<[1], [0], [0], [1], [0, 0, 1, 1], [], []>} : vector<8x64xbf16>, vector<64x32xbf16>, vector<8x32xf32> -> vector<8x32xf32>
    %c0_21 = arith.constant 0 : index
    %c0_22 = arith.constant 0 : index
    %43 = vector.load %arg8[%c0_21, %c0_22] : memref<1x32xf32, #tpu.memory_space<vmem>>, vector<1x32xf32>
    %44 = vector.broadcast %43 : vector<1x32xf32> to vector<8x32xf32>
    %45 = arith.addf %42, %44 : vector<8x32xf32>
    %46 = arith.addf %1, %45 : vector<8x32xf32>
    %c0_23 = arith.constant 0 : index
    %c0_24 = arith.constant 0 : index
    %c0_25 = arith.constant 0 : index
    %47 = vector.load %arg9[%c0_23, %c0_24, %c0_25] : memref<1x8x32xf32, #tpu.memory_space<vmem>>, vector<1x8x32xf32>
    %48 = vector.shape_cast %47 : vector<1x8x32xf32> to vector<8x32xf32>
    %49 = vector.shape_cast %46 : vector<8x32xf32> to vector<1x8x32xf32>
    tpu.vector_store %arg9[%c0_23, %c0_24, %c0_25], %49 {strides = array<i32>} : memref<1x8x32xf32, #tpu.memory_space<vmem>>, vector<1x8x32xf32>,
    return
  }
  func.func @transform_0(%arg0: i32, %arg1: i32) -> (i32, i32, i32) {
    %c0_i32 = arith.constant 0 : i32
    %c0_i32_0 = arith.constant 0 : i32
    return %arg0, %arg1, %c0_i32 : i32, i32, i32
  }
  func.func @transform_1(%arg0: i32, %arg1: i32) -> (i32, i32) {
    %c0_i32 = arith.constant 0 : i32
    %c0_i32_0 = arith.constant 0 : i32
    %c0_i32_1 = arith.constant 0 : i32
    return %c0_i32, %c0_i32_0 : i32, i32
  }
  func.func @transform_2(%arg0: i32, %arg1: i32) -> (i32, i32) {
    %c0_i32 = arith.constant 0 : i32
    %c0_i32_0 = arith.constant 0 : i32
    %c0_i32_1 = arith.constant 0 : i32
    return %c0_i32, %c0_i32_0 : i32, i32
  }
  func.func @transform_3(%arg0: i32, %arg1: i32) -> (i32, i32) {
    %c0_i32 = arith.constant 0 : i32
    %c0_i32_0 = arith.constant 0 : i32
    %c0_i32_1 = arith.constant 0 : i32
    return %c0_i32, %c0_i32_0 : i32, i32
  }
  func.func @transform_4(%arg0: i32, %arg1: i32) -> (i32, i32) {
    %c0_i32 = arith.constant 0 : i32
    %c0_i32_0 = arith.constant 0 : i32
    %c0_i32_1 = arith.constant 0 : i32
    return %c0_i32, %c0_i32_0 : i32, i32
  }
  func.func @transform_5(%arg0: i32, %arg1: i32) -> (i32, i32) {
    %c0_i32 = arith.constant 0 : i32
    %c0_i32_0 = arith.constant 0 : i32
    %c0_i32_1 = arith.constant 0 : i32
    return %c0_i32, %c0_i32_0 : i32, i32
  }
  func.func @transform_6(%arg0: i32, %arg1: i32) -> (i32, i32) {
    %c0_i32 = arith.constant 0 : i32
    %c0_i32_0 = arith.constant 0 : i32
    %c0_i32_1 = arith.constant 0 : i32
    return %c0_i32, %c0_i32_0 : i32, i32
  }
  func.func @transform_7(%arg0: i32, %arg1: i32) -> (i32, i32, i32) {
    %c0_i32 = arith.constant 0 : i32
    %c0_i32_0 = arith.constant 0 : i32
    return %arg0, %arg1, %c0_i32 : i32, i32, i32
  }
}

</mosaic_0001>

<bundles_post_ra>
// kernel: tpu_custom_call.1
= control target key start
LH: loop header
LB: loop body
LE: loop exit
PB: predicated region body
PF: predicated region fallthrough
CT: control target
= control target key end

     0   :  { %6 = vsyncpa [#allocation3], 0  ;;  %s125_s0 = inlined_call_operand.hbm [shape: f32[8,128], index: 0, kind: input, shape index: {}]   ;;  %s126_s1 = inlined_call_operand.hbm [shape: f32[8,128], index: 1, kind: output, shape index: {}]  }
   0x1   :  { %7 = vsyncpa [#allocation4], 0  ;;  %s89_s6 = smov [#allocation2]   ;;  %s41_s10 = scalar_lea.hbm %s125_s0, 128 }
   0x2   :  { %s14_s7 = sshll.u32 %s89_s6, 4  ;;  %p42_p0 = scmp.ne.s32.totalorder %s125_s0, %s41_s10  ;;  %s15_s7 = int_to_ptr.vmem [resolvable:$true] %s14_s7 }
   0x3   :  { %p45_p1 = scmp.lt.u32.totalorder %s41_s10, %s125_s0 }
   0x5   :  { %p47_p2 = pnand %p45_p1, %p42_p0 }
   0x7   :  { %50 = shalt.err (!%p47_p2)
}
   0x8   :  { %s51_s15 = scalar_lea.vmem %s15_s7, 128  ;;  %p56_p4 = scmp.lt.s32.totalorder %s15_s7, %s15_s7 }
   0x9   :  { %p52_p3 = scmp.ne.s32.totalorder %s15_s7, %s51_s15  ;;  %p57_p5 = scmp.lt.s32.totalorder %s51_s15, %s51_s15 }
   0xb   :  { %p58_p6 = por %p57_p5, %p56_p4 }
   0xd   :  { %p59_p7 = pnand %p58_p6, %p52_p3 }
   0xf   :  { %62 = shalt.err (!%p59_p7)
}
  0x10   :  { %17 = dma.hbm_to_vmem [thread:$0]  %s125_s0, 128, %s15_s7, [#allocation3]  }
  0x11   :  { %85 = dma.done.wait [#allocation3], 128  }
  0x12   :  { %86 = vsyncadd [#allocation3], 4294967168  ;;  %s90_s18 = smov [#allocation5]   ;;  %v21_v0 = vld [vmem:[#allocation2] sm:$0xff] }
  0x13   :  { %s30_s19 = sshll.u32 %s90_s18, 4  ;;  %v22_v1 = vadd.f32 1.0, %v21_v0  ;;  %s31_s19 = int_to_ptr.vmem [resolvable:$true] %s30_s19 }
  0x14   :  { %s63_s20 = scalar_lea.vmem %s31_s19, 128  ;;  %p68_p9 = scmp.lt.s32.totalorder %s31_s19, %s31_s19 }
  0x15   :  { %23 = vst [vmem:[#allocation5] sm:$0xff] %v22_v1  ;;  %p64_p8 = scmp.ne.s32.totalorder %s31_s19, %s63_s20  ;;  %p69_p10 = scmp.lt.s32.totalorder %s63_s20, %s63_s20 }
  0x17   :  { %p70_p11 = por %p69_p10, %p68_p9 }
  0x19   :  { %p71_p12 = pnand %p70_p11, %p64_p8 }
  0x1b   :  { %74 = shalt.err (!%p71_p12)
}
  0x1c   :  { %s75_s23 = scalar_lea.hbm %s126_s1, 128 }
  0x1d   :  { %p76_p13 = scmp.ne.s32.totalorder %s126_s1, %s75_s23  ;;  %p79_p0 = scmp.lt.u32.totalorder %s75_s23, %s126_s1 }
  0x1f   :  { %p81_p1 = pnand %p79_p0, %p76_p13 }
  0x21   :  { %84 = shalt.err (!%p81_p1)
}
  0x22   :  { %33 = dma.vmem_to_hbm [thread:$0]  %s31_s19, 128, %s126_s1, [#allocation4]  }
  0x23   :  { %87 = dma.done.wait [#allocation4], 128  }
  0x24   :  { %88 = vsyncadd [#allocation4], 4294967168 }
  0x25   :  { %37 = vsyncpa [#allocation3], 1 }
  0x26   :  { %38 = vsyncpa [#allocation4], 1 }

// kernel: encoder_forward.8
= control target key start
LH: loop header
LB: loop body
LE: loop exit
PB: predicated region body
PF: predicated region fallthrough
CT: control target
= control target key end

     0   :  { %s721_s24 = smov 0   ;;  %s723_s25 = smov 0   ;;  %s800_s0 = inlined_call_operand.vmem [shape: f32[2,8,32], index: 0, kind: input, shape index: {}]   ;;  %s801_s1 = inlined_call_operand.vmem [shape: f32[1,32], index: 1, kind: input, shape index: {}]   ;;  %s802_s2 = inlined_call_operand.vmem [shape: f32[1,32], index: 2, kind: input, shape index: {}]   ;;  %s803_s3 = inlined_call_operand.vmem [shape: bf16[32,64], index: 3, kind: input, shape index: {}]   ;;  %s804_s4 = inlined_call_operand.vmem [shape: f32[1,64], index: 4, kind: input, shape index: {}]   ;;  %s805_s5 = inlined_call_operand.vmem [shape: bf16[64,32], index: 5, kind: input, shape index: {}]   ;;  %s806_s6 = inlined_call_operand.vmem [shape: f32[1,32], index: 6, kind: input, shape index: {}]   ;;  %s807_s7 = inlined_call_operand.vmem [shape: f32[2,8,32], index: 7, kind: output, shape index: {}]  }
   0x1   :  { %s725_s26 = smov 0  }
   0x2 LB: > { %s29_s27 = sadd.s32 1, %s673_s25  ;;  %p574_p0 = scmp.ge.s32.totalorder %s677_s26, 1  ;;  %s677_s26 = sphi %s725_s26, %s17_s26   ;;  %s673_s25 = sphi %s723_s25, %s809_s25   ;;  %s669_s24 = sphi %s721_s24, %s808_s24  }
   0x3   : > { %p31_p1 = scmp.ge.s32.totalorder %s29_s27, 2  ;;  %p255_p2 = scmp.lt.s32.totalorder %s677_s26, 3 }
   0x5   : > { %s811_s27 = smov (%p31_p1, %s29_s27), 0  ;;  %p256_p3 = pnand %p574_p0, %p255_p2 }
   0x6   : > { %p291_p4 = scmp.lt.s32.totalorder (!%p256_p3), %s669_s24, 1  ;;  %vm309_vm0 = vcmask (!%p256_p3), 261120   ;;  %v645_v7 = vld [vmem:[%s803_s3] sm:$0xff] (!%p256_p3)   ;;  %v679_v8 = vmov (!%p256_p3), 0.0   ;;  %v646_v9 = vld [vmem:[%s803_s3 + $0x8] sm:$0xff] (!%p256_p3)   ;;  %vm680_vm1 = vmmov (!%p256_p3), 0  }
   0x7   : > { %259 = sbr.rel (%p256_p3) target bundleno = 783 (0x30f), region = 48  ;;  %599 = vmatprep.subr.bf16.mxu0 (!%p256_p3), %v679_v8  ;;  %607 = vmatprep.subr.bf16.mxu1 (!%p256_p3), %v679_v8  ;;  %v577_v14 = vld [vmem:[%s801_s1] ss:$0 sm:$0xff] (!%p256_p3)  ;;  %v648_v21 = vld [vmem:[%s805_s5 + $0x8] sm:$0xff] (!%p256_p3)   ;;  %v649_v22 = vld [vmem:[%s805_s5 + $0x10] sm:$0xff] (!%p256_p3)   ;;  %vm450_vm2 = vcmask (!%p256_p3), 523264  }
   0x8   : > { %600 = vmatpush3.bf16.msra.mxu0 (!%p256_p3), %v645_v7  ;;  %603 = vmatprep.mubr.msk.bf16.mxu0 (!%p256_p3), %vm680_vm1, %v679_v8  ;;  %v578_v16 = vld [vmem:[%s802_s2] ss:$0 sm:$0xff] (!%p256_p3)  ;;  %v650_v23 = vld [vmem:[%s805_s5 + $0x18] sm:$0xff] (!%p256_p3)  }
   0x9   : > { %601 = vmatprep.subr.bf16.mxu0 (!%p256_p3), %v679_v8  ;;  %615 = vmatprep.mubr.msk.bf16.mxu1 (!%p256_p3), %vm680_vm1, %v679_v8  ;;  %v647_v20 = vld [vmem:[%s805_s5] sm:$0xff] (!%p256_p3)  }
   0xa   : > { %608 = vmatpush3.bf16.msra.mxu1 (!%p256_p3), %v647_v20  ;;  %v579_v24 = vld [vmem:[%s804_s4] ss:$0 sm:$0xff] (!%p256_p3) }
   0xb   : > { %609 = vmatprep.subr.bf16.mxu1 (!%p256_p3), %v679_v8  ;;  %v583_v36 = vld [vmem:[%s806_s6] ss:$0 sm:$0xff] (!%p256_p3) }
   0xc   : > { %602 = vmatpush3.bf16.msra.mxu0 (!%p256_p3), %v646_v9 }
   0xe   : > { %s813_s24 = smov (!%p291_p4, %s669_s24), 1  ;;  %610 = vmatpush3.bf16.msra.mxu1 %v648_v21 }
   0xf   : > { %s575_s28 = sshll.u32 %s813_s24, 3  ;;  %611 = vmatprep.subr.bf16.mxu1 %v679_v8 }
  0x10   : > { %s297_s8 = scalar_lea.vmem %s800_s0, %s575_s28  ;;  %s304_s13 = scalar_lea.vmem %s807_s7, %s575_s28 }
  0x11   : > { %v747_v0 = vld [vmem:[%s297_s8] sm:$0xff] }
  0x12   : > { %v310_v1 = vsel %vm309_vm0, %v747_v0, 0.0  ;;  %612 = vmatpush3.bf16.msra.mxu1 %v649_v22 }
  0x13   : > { %311 = vadd.xlane.f32.xlu0 %v310_v1  ;;  %613 = vmatprep.subr.bf16.mxu1 %v679_v8 }
  0x16   : > { %614 = vmatpush3.bf16.msra.mxu1 %v650_v23 }
  0xa0   : > { %v312_v2 = vpop.xlane.xlu0 %311 }
  0xa1   : > { %v314_v3 = vmul.f32 0.03125, %v312_v2 }
  0xa3   : > { %v315_v4 = vsub.f32 %v747_v0, %v314_v3 }
  0xa5   : > { %v316_v5 = vmul.f32 %v315_v4, %v315_v4 }
  0xa7   : > { %v317_v6 = vsel %vm309_vm0, %v316_v5, 0.0 }
  0xa8   : > { %318 = vadd.xlane.f32.xlu0 %v317_v6 }
 0x135   : > { %v319_v10 = vpop.xlane.xlu0 %318 }
 0x136   : > { %v320_v11 = vmul.f32 0.03125, %v319_v10 }
 0x138   : > { %v321_v12 = vadd.f32 1e-05, %v320_v11 }
 0x13a   : > { %651 = vrsqrt.f32 %v321_v12 }
 0x144   : > { %v652_v13 = vpop.eup %651 }
 0x145   : > { %v323_v15 = vmul.f32 %v652_v13, %v315_v4 }
 0x147   : > { %v330_v17 = vmul.f32 %v577_v14, %v323_v15 }
 0x149   : > { %v337_v18 = vadd.f32 %v578_v16, %v330_v17 }
 0x14b   : > { %v338_v19 = vpack.c.bf16 %v337_v18, %v337_v18 }
 0x14d   : > { %604 = vmatmul.mubr.msk.bf16.vlgmr.msra.gmra.mrb[0].mxu0 %vm309_vm0, %v338_v19 }
 0x220   : > { %v399_v25 = vpop.f32.mrb[0].mxu0 }
 0x221   : > { %v400_v26 = vadd.f32 %v579_v24, %v399_v25  ;;  %v605_v27 = vpop.f32.mrb[1].mxu0 }
 0x222   : > { %v402_v28 = vpop.f32.mrb[2].mxu0 }
 0x223   : > { %v406_v29 = vmul.f32 0.70710677, %v400_v26  ;;  %v606_v30 = vpop.f32.mrb[3].mxu0  ;;  %v405_v32 = vmul.f32 0.5, %v400_v26 }
 0x225   : > { %653 = verf.f32 %v406_v29 }
 0x22f   : > { %v654_v31 = vpop.eup %653 }
 0x230   : > { %v408_v33 = vadd.f32 1.0, %v654_v31 }
 0x232   : > { %v409_v34 = vmul.f32 %v408_v33, %v405_v32 }
 0x234   : > { %v410_v35 = vpack.c.bf16 %v409_v34, %v409_v34 }
 0x236   : > { %616 = vmatmul.mubr.msk.bf16.vlgmr.msra.gmra.mrb[0].mxu1 %vm450_vm2, %v410_v35 }
 0x309   : > { %v488_v37 = vpop.f32.mrb[0].mxu1 }
 0x30a   : > { %v489_v38 = vadd.f32 %v583_v36, %v488_v37  ;;  %v617_v39 = vpop.f32.mrb[1].mxu1 }
 0x30b   : > { %v491_v40 = vpop.f32.mrb[2].mxu1 }
 0x30c   : > { %v494_v41 = vadd.f32 %v489_v38, %v747_v0  ;;  %v618_v42 = vpop.f32.mrb[3].mxu1 }
 0x30e   : > { %495 = vst.msk [vmem:[%s304_s13] sm:$0xff] %vm309_vm0, %v494_v41 }
 0x30f PF: > { %s17_s26 = sadd.s32 1, %s677_s26   ;;  %s808_s24 = smov %s673_s25 }
 0x310   : > { %p14_p5 = scmp.ge.s32.totalorder %s17_s26, 4   ;;  %s809_s25 = smov %s811_s27 }
 0x312   :  { %16 = sbr.rel (!%p14_p5) target bundleno = 2 (0x2), region = 78 }

// kernel: encoder_forward.6
= control target key start
LH: loop header
LB: loop body
LE: loop exit
PB: predicated region body
PF: predicated region fallthrough
CT: control target
= control target key end

     0   :  { %13 = vsyncpa [#allocation3], 0  ;;  %s814_s24 = smov 0   ;;  %s816_s25 = smov 0   ;;  %s915_s0 = inlined_call_operand.vmem [shape: f32[2,8,32], index: 0, kind: input, shape index: {}]   ;;  %s916_s1 = inlined_call_operand.vmem [shape: f32[1,32], index: 1, kind: input, shape index: {}]   ;;  %s917_s2 = inlined_call_operand.hbm [shape: f32[1,32], index: 2, kind: input, shape index: {}]   ;;  %s918_s3 = inlined_call_operand.vmem [shape: bf16[32,96], index: 3, kind: input, shape index: {}]   ;;  %s919_s4 = inlined_call_operand.vmem [shape: f32[1,96], index: 4, kind: input, shape index: {}]   ;;  %s920_s5 = inlined_call_operand.vmem [shape: bf16[2,8,32], index: 5, kind: output, shape index: {0}]   ;;  %s921_s6 = inlined_call_operand.vmem [shape: bf16[2,8,32], index: 6, kind: output, shape index: {1}]   ;;  %s922_s7 = inlined_call_operand.vmem [shape: bf16[2,8,32], index: 7, kind: output, shape index: {2}]  }
   0x1   :  { %s818_s26 = smov 0  }
   0x2 LB: > { %s638_s27 = sadd.s32 4294967295, %s767_s26   ;;  %s31_s28 = sadd.s32 1, %s763_s25  ;;  %s767_s26 = sphi %s818_s26, %s19_s26   ;;  %s763_s25 = sphi %s816_s25, %s932_s25   ;;  %s759_s24 = sphi %s814_s24, %s931_s24  }
   0x3   : > { %p33_p0 = scmp.ge.s32.totalorder %s31_s28, 2  ;;  %p640_p1 = scmp.ge.s32.totalorder %s767_s26, 1 }
   0x4   : > { %p232_p2 = scmp.lt.s32.totalorder %s767_s26, 3  ;;  %p839_p4 = scmp.eq.s32.totalorder %s638_s27, 0 }
   0x5   : > { %s934_s28 = smov (%p33_p0, %s31_s28), 0  ;;  %s769_s8 = smov [#allocation2]  }
   0x6   : > { %p835_p3 = pnand %p640_p1, %p232_p2  ;;  %s248_s9 = sshll.u32 %s769_s8, 4  ;;  %s249_s9 = int_to_ptr.vmem [resolvable:$true] %s248_s9 }
   0x7   : > { %s927_s30 = scalar_select %p839_p4, 1, 0 }
   0x8   : > { %s926_s29 = scalar_select %p835_p3, 1, 0 }
   0x9   : > { %p674_p5 = pneg %p835_p3  ;;  %s713_s13 = scalar_lea.hbm %s917_s2, 16 }
   0xa   : > { %p714_p7 = scmp.ne.s32.totalorder %s917_s2, %s713_s13  ;;  %p720_p11 = scmp.lt.u32.totalorder %s713_s13, %s917_s2 }
   0xb   : > { %p847_p6 = pnand %p839_p4, %p674_p5 }
   0xd   : > { %p715_p8 = pneg %p847_p6 }
   0xf   : > { %p716_p9 = pnand %p715_p8, %p714_p7 }
  0x11   : > { %p717_p10 = pneg %p716_p9 }
  0x13   : > { %p722_p12 = pnand %p720_p11, %p717_p10 }
  0x15   : > { %725 = shalt.err (!%p722_p12)
}
  0x16   : > { %s726_s18 = scalar_lea.vmem %s249_s9, 16  ;;  %s733_s19 = scalar_lea.vmem %s249_s9, 32 }
  0x17   : > { %p727_p13 = scmp.ne.s32.totalorder %s249_s9, %s726_s18  ;;  %p734_p2 = scmp.lt.s32.totalorder %s249_s9, %s249_s9 }
  0x18   : > { %p735_p5 = scmp.lt.s32.totalorder %s733_s19, %s726_s18 }
  0x19   : > { %p729_p0 = pnand %p727_p13, %p715_p8 }
  0x1a   : > { %p736_p4 = por %p735_p5, %p734_p2 }
  0x1b   : > { %p730_p1 = pneg %p729_p0 }
  0x1d   : > { %p737_p3 = pnand %p736_p4, %p730_p1 }
  0x1f   : > { %740 = shalt.err (!%p737_p3)
}
  0x20   : > { %677 = dma.hbm_to_vmem [thread:$0]  (!%p847_p6), %s917_s2, 16, %s249_s9, [#allocation3]  }
  0x21   : > { %p929_p7 = scmp.ne.s32.totalorder %s926_s29, 0 }
  0x22   : > { %p930_p9 = scmp.ne.s32.totalorder (!%p929_p7), %s927_s30, 0 }
  0x23   : > { %277 = sbr.rel (%p929_p7) target bundleno = 700 (0x2bc), region = 40 }
  0x2a   : > { %754 = dma.done.wait (%p930_p9), [#allocation3], 16  }
  0x2b   : > { %756 = vsyncadd (%p930_p9), [#allocation3], 4294967280  ;;  %p327_p8 = scmp.lt.s32.totalorder %s759_s24, 1  ;;  %vm359_vm0 = vcmask 261120   ;;  %v709_v7 = vld [vmem:[%s918_s3] sm:$0xff]   ;;  %v770_v8 = vmov 0.0  }
  0x2c   : > { %662 = vmatprep.subr.bf16.mxu0 %v770_v8  ;;  %v710_v9 = vld [vmem:[%s918_s3 + $0x8] sm:$0xff]   ;;  %vm771_vm1 = vmmov 0   ;;  %v649_v14 = vld [vmem:[%s916_s1] ss:$0 sm:$0xff]  ;;  %v650_v16 = vld [vmem:[#allocation2] ss:$0 sm:$0xff] }
  0x2d   : > { %s936_s24 = smov (!%p327_p8, %s759_s24), 1  ;;  %663 = vmatpush3.bf16.msra.mxu0 %v709_v7  ;;  %666 = vmatprep.mubr.msk.bf16.mxu0 %vm771_vm1, %v770_v8  ;;  %v651_v20 = vld [vmem:[%s919_s4] ss:$0 sm:$0xff]  ;;  %vm456_vm2 = vcmask 257024   ;;  %s772_s19 = smov 96  }
  0x2e   : > { %s645_s22 = sshll.u32 %s936_s24, 3  ;;  %664 = vmatprep.subr.bf16.mxu0 %v770_v8  ;;  %s646_s15 = sshll.u32 %s936_s24, 2 }
  0x2f   : > { %s333_s8 = scalar_lea.vmem %s915_s0, %s645_s22  ;;  %s340_s18 = scalar_lea.vmem %s920_s5, %s646_s15 }
  0x30   : > { %v356_v0 = vld [vmem:[%s333_s8] sm:$0xff]  ;;  %s773_s20 = smov 64   ;;  %s347_s24 = scalar_lea.vmem %s921_s6, %s646_s15 }
  0x31   : > { %v360_v1 = vsel %vm359_vm0, %v356_v0, 0.0  ;;  %665 = vmatpush3.bf16.msra.mxu0 %v710_v9  ;;  %s354_s8 = scalar_lea.vmem %s922_s7, %s646_s15 }
  0x32   : > { %361 = vadd.xlane.f32.xlu0 %v360_v1 }
  0xbf   : > { %v362_v2 = vpop.xlane.xlu0 %361 }
  0xc0   : > { %v364_v3 = vmul.f32 0.03125, %v362_v2 }
  0xc2   : > { %v365_v4 = vsub.f32 %v356_v0, %v364_v3 }
  0xc4   : > { %v366_v5 = vmul.f32 %v365_v4, %v365_v4 }
  0xc6   : > { %v367_v6 = vsel %vm359_vm0, %v366_v5, 0.0 }
  0xc7   : > { %368 = vadd.xlane.f32.xlu0 %v367_v6 }
 0x154   : > { %v369_v10 = vpop.xlane.xlu0 %368 }
 0x155   : > { %v370_v11 = vmul.f32 0.03125, %v369_v10 }
 0x157   : > { %v371_v12 = vadd.f32 1e-05, %v370_v11 }
 0x159   : > { %711 = vrsqrt.f32 %v371_v12 }
 0x163   : > { %v712_v13 = vpop.eup %711 }
 0x164   : > { %v373_v15 = vmul.f32 %v712_v13, %v365_v4 }
 0x166   : > { %v380_v17 = vmul.f32 %v649_v14, %v373_v15 }
 0x168   : > { %v387_v18 = vadd.f32 %v650_v16, %v380_v17 }
 0x16a   : > { %v388_v19 = vpack.c.bf16 %v387_v18, %v387_v18 }
 0x16c   : > { %667 = vmatmul.mubr.msk.bf16.vlgmr.msra.gmra.mrb[0].mxu0 %vm359_vm0, %v388_v19 }
 0x23f   : > { %v449_v21 = vpop.f32.mrb[0].mxu0 }
 0x240   : > { %v450_v22 = vadd.f32 %v651_v20, %v449_v21  ;;  %v668_v23 = vpop.f32.mrb[1].mxu0 }
 0x241   : > { %v452_v24 = vpop.f32.mrb[2].mxu0 }
 0x242   : > { %v455_v25 = vpack.c.bf16 %v450_v22, %v450_v22  ;;  %v669_v26 = vpop.f32.mrb[3].mxu0 }
 0x244   : > { %461 = vrot.lane.b32.xlu1 %v455_v25, %s772_s19  ;;  %457 = vst.msk [vmem:[%s340_s18] sm:$0xf] %vm456_vm2, %v455_v25 }
 0x248   : > { %465 = vrot.lane.b32.xlu1 %v455_v25, %s773_s20 }
 0x2b6   : > { %v462_v27 = vpop.permute.xlu1 %461 }
 0x2b7   : > { %464 = vst.msk [vmem:[%s347_s24] sm:$0xf] %vm456_vm2, %v462_v27 }
 0x2ba   : > { %v466_v28 = vpop.permute.xlu1 %465 }
 0x2bb   : > { %468 = vst.msk [vmem:[%s354_s8] sm:$0xf] %vm456_vm2, %v466_v28 }
 0x2bc PF: > { %s19_s26 = sadd.s32 1, %s767_s26   ;;  %s931_s24 = smov %s763_s25 }
 0x2bd   : > { %p16_p3 = scmp.ge.s32.totalorder %s19_s26, 4   ;;  %s932_s25 = smov %s934_s28 }
 0x2bf   :  { %18 = sbr.rel (!%p16_p3) target bundleno = 2 (0x2), region = 99 }
 0x2c6   :  { %534 = vsyncpa [#allocation3], 1 }
 0x2c7   :  { %536 = vsyncpa [#allocation3 + $0x1], 1 }

// kernel: encoder_forward.9
= control target key start
LH: loop header
LB: loop body
LE: loop exit
PB: predicated region body
PF: predicated region fallthrough
CT: control target
= control target key end

     0   :  { %s742_s24 = smov 0   ;;  %s744_s25 = smov 0   ;;  %s803_s0 = inlined_call_operand.vmem [shape: f32[2,8,32], index: 0, kind: input, shape index: {}]   ;;  %s804_s1 = inlined_call_operand.vmem [shape: f32[1,32], index: 1, kind: input, shape index: {}]   ;;  %s805_s2 = inlined_call_operand.vmem [shape: f32[1,32], index: 2, kind: input, shape index: {}]   ;;  %s806_s3 = inlined_call_operand.vmem [shape: bf16[32,96], index: 3, kind: input, shape index: {}]   ;;  %s807_s4 = inlined_call_operand.vmem [shape: f32[1,96], index: 4, kind: input, shape index: {}]   ;;  %s808_s5 = inlined_call_operand.vmem [shape: bf16[2,8,32], index: 5, kind: output, shape index: {0}]   ;;  %s809_s6 = inlined_call_operand.vmem [shape: bf16[2,8,32], index: 6, kind: output, shape index: {1}]   ;;  %s810_s7 = inlined_call_operand.vmem [shape: bf16[2,8,32], index: 7, kind: output, shape index: {2}]  }
   0x1   :  { %s746_s26 = smov 0  }
   0x2 LB: > { %s30_s27 = sadd.s32 1, %s692_s25  ;;  %p616_p0 = scmp.ge.s32.totalorder %s696_s26, 1  ;;  %s696_s26 = sphi %s746_s26, %s18_s26   ;;  %s692_s25 = sphi %s744_s25, %s812_s25   ;;  %s688_s24 = sphi %s742_s24, %s811_s24  }
   0x3   : > { %p32_p1 = scmp.ge.s32.totalorder %s30_s27, 2  ;;  %p264_p2 = scmp.lt.s32.totalorder %s696_s26, 3 }
   0x5   : > { %s814_s27 = smov (%p32_p1, %s30_s27), 0  ;;  %p265_p3 = pnand %p616_p0, %p264_p2 }
   0x6   : > { %p314_p4 = scmp.lt.s32.totalorder (!%p265_p3), %s688_s24, 1  ;;  %vm346_vm0 = vcmask (!%p265_p3), 261120   ;;  %v670_v7 = vld [vmem:[%s806_s3] sm:$0xff] (!%p265_p3)   ;;  %v698_v8 = vmov (!%p265_p3), 0.0   ;;  %v671_v9 = vld [vmem:[%s806_s3 + $0x8] sm:$0xff] (!%p265_p3)   ;;  %vm699_vm1 = vmmov (!%p265_p3), 0  }
   0x7   : > { %268 = sbr.rel (%p265_p3) target bundleno = 669 (0x29d), region = 40  ;;  %634 = vmatprep.subr.bf16.mxu0 (!%p265_p3), %v698_v8  ;;  %638 = vmatprep.mubr.msk.bf16.mxu0 (!%p265_p3), %vm699_vm1, %v698_v8  ;;  %v621_v14 = vld [vmem:[%s804_s1] ss:$0 sm:$0xff] (!%p265_p3)  ;;  %vm443_vm2 = vcmask (!%p265_p3), 257024   ;;  %s700_s23 = smov (!%p265_p3), 96  }
   0x8   : > { %635 = vmatpush3.bf16.msra.mxu0 (!%p265_p3), %v670_v7  ;;  %v622_v16 = vld [vmem:[%s805_s2] ss:$0 sm:$0xff] (!%p265_p3) }
   0x9   : > { %636 = vmatprep.subr.bf16.mxu0 (!%p265_p3), %v698_v8  ;;  %v623_v20 = vld [vmem:[%s807_s4] ss:$0 sm:$0xff] (!%p265_p3) }
   0xc   : > { %637 = vmatpush3.bf16.msra.mxu0 (!%p265_p3), %v671_v9 }
   0xe   : > { %s816_s24 = smov (!%p314_p4, %s688_s24), 1 }
   0xf   : > { %s617_s28 = sshll.u32 %s816_s24, 3  ;;  %s618_s19 = sshll.u32 %s816_s24, 2 }
  0x10   : > { %s320_s8 = scalar_lea.vmem %s803_s0, %s617_s28  ;;  %s327_s22 = scalar_lea.vmem %s808_s5, %s618_s19 }
  0x11   : > { %v343_v0 = vld [vmem:[%s320_s8] sm:$0xff]  ;;  %s701_s28 = smov 64   ;;  %s334_s24 = scalar_lea.vmem %s809_s6, %s618_s19 }
  0x12   : > { %v347_v1 = vsel %vm346_vm0, %v343_v0, 0.0  ;;  %s341_s10 = scalar_lea.vmem %s810_s7, %s618_s19 }
  0x13   : > { %348 = vadd.xlane.f32.xlu0 %v347_v1 }
  0xa0   : > { %v349_v2 = vpop.xlane.xlu0 %348 }
  0xa1   : > { %v351_v3 = vmul.f32 0.03125, %v349_v2 }
  0xa3   : > { %v352_v4 = vsub.f32 %v343_v0, %v351_v3 }
  0xa5   : > { %v353_v5 = vmul.f32 %v352_v4, %v352_v4 }
  0xa7   : > { %v354_v6 = vsel %vm346_vm0, %v353_v5, 0.0 }
  0xa8   : > { %355 = vadd.xlane.f32.xlu0 %v354_v6 }
 0x135   : > { %v356_v10 = vpop.xlane.xlu0 %355 }
 0x136   : > { %v357_v11 = vmul.f32 0.03125, %v356_v10 }
 0x138   : > { %v358_v12 = vadd.f32 1e-05, %v357_v11 }
 0x13a   : > { %672 = vrsqrt.f32 %v358_v12 }
 0x144   : > { %v673_v13 = vpop.eup %672 }
 0x145   : > { %v360_v15 = vmul.f32 %v673_v13, %v352_v4 }
 0x147   : > { %v367_v17 = vmul.f32 %v621_v14, %v360_v15 }
 0x149   : > { %v374_v18 = vadd.f32 %v622_v16, %v367_v17 }
 0x14b   : > { %v375_v19 = vpack.c.bf16 %v374_v18, %v374_v18 }
 0x14d   : > { %639 = vmatmul.mubr.msk.bf16.vlgmr.msra.gmra.mrb[0].mxu0 %vm346_vm0, %v375_v19 }
 0x220   : > { %v436_v21 = vpop.f32.mrb[0].mxu0 }
 0x221   : > { %v437_v22 = vadd.f32 %v623_v20, %v436_v21  ;;  %v640_v23 = vpop.f32.mrb[1].mxu0 }
 0x222   : > { %v439_v24 = vpop.f32.mrb[2].mxu0 }
 0x223   : > { %v442_v25 = vpack.c.bf16 %v437_v22, %v437_v22  ;;  %v641_v26 = vpop.f32.mrb[3].mxu0 }
 0x225   : > { %448 = vrot.lane.b32.xlu1 %v442_v25, %s700_s23  ;;  %444 = vst.msk [vmem:[%s327_s22] sm:$0xf] %vm443_vm2, %v442_v25 }
 0x229   : > { %452 = vrot.lane.b32.xlu1 %v442_v25, %s701_s28 }
 0x297   : > { %v449_v27 = vpop.permute.xlu1 %448 }
 0x298   : > { %451 = vst.msk [vmem:[%s334_s24] sm:$0xf] %vm443_vm2, %v449_v27 }
 0x29b   : > { %v453_v28 = vpop.permute.xlu1 %452 }
 0x29c   : > { %455 = vst.msk [vmem:[%s341_s10] sm:$0xf] %vm443_vm2, %v453_v28 }
 0x29d PF: > { %s18_s26 = sadd.s32 1, %s696_s26   ;;  %s811_s24 = smov %s692_s25 }
 0x29e   : > { %p15_p5 = scmp.ge.s32.totalorder %s18_s26, 4   ;;  %s812_s25 = smov %s814_s27 }
 0x2a0   :  { %17 = sbr.rel (!%p15_p5) target bundleno = 2 (0x2), region = 94 }

// kernel: encoder_forward.7
= control target key start
LH: loop header
LB: loop body
LE: loop exit
PB: predicated region body
PF: predicated region fallthrough
CT: control target
= control target key end

     0   :  { %s1596_s21 = smov 0   ;;  %s1598_s22 = smov 0   ;;  %s1813_s0 = inlined_call_operand.vmem [shape: bf16[2,8,32], index: 0, kind: input, shape index: {}]   ;;  %s1814_s1 = inlined_call_operand.vmem [shape: bf16[2,8,32], index: 1, kind: input, shape index: {}]   ;;  %s1815_s2 = inlined_call_operand.vmem [shape: bf16[2,8,32], index: 2, kind: input, shape index: {}]   ;;  %s1816_s3 = inlined_call_operand.vmem [shape: f32[2,8,32], index: 3, kind: input, shape index: {}]   ;;  %s1817_s4 = inlined_call_operand.vmem [shape: bf16[4,8,32], index: 4, kind: input, shape index: {}]   ;;  %s1818_s5 = inlined_call_operand.vmem [shape: f32[1,32], index: 5, kind: input, shape index: {}]   ;;  %s1819_s6 = inlined_call_operand.vmem [shape: f32[2,8,32], index: 6, kind: output, shape index: {}]  }
   0x1   :  { %s1600_s23 = smov 0  }
   0x2 LB: > { %s35_s24 = sadd.s32 1, %s1548_s22  ;;  %p1335_p0 = scmp.ge.s32.totalorder %s1552_s23, 1  ;;  %s1552_s23 = sphi %s1600_s23, %s16_s23   ;;  %s1548_s22 = sphi %s1598_s22, %s1821_s22   ;;  %s1544_s21 = sphi %s1596_s21, %s1820_s21  }
   0x3   : > { %p37_p1 = scmp.ge.s32.totalorder %s35_s24, 2  ;;  %p279_p2 = scmp.lt.s32.totalorder %s1552_s23, 3 }
   0x5   : > { %s1823_s24 = smov (%p37_p1, %s35_s24), 0  ;;  %p280_p3 = pnand %p1335_p0, %p279_p2 }
   0x6   : > { %p334_p4 = scmp.lt.s32.totalorder (!%p280_p3), %s1544_s21, 1  ;;  %vm383_vm0 = vcmask (!%p280_p3), 64512   ;;  %v1554_v0 = vmov (!%p280_p3), 0.0   ;;  %vm1555_vm1 = vmmov (!%p280_p3), 0   ;;  %vm374_vm2 = vcmask (!%p280_p3), 7168   ;;  %s1558_s8 = smov (!%p280_p3), 120  }
   0x7   : > { %283 = sbr.rel (%p280_p3) target bundleno = 1567 (0x61f), region = 44  ;;  %1392 = vmatprep.subr.bf16.mxu0 (!%p280_p3), %v1554_v0  ;;  %384 = vst.msk [vmem:[#allocation4] sm:$0xff] (!%p280_p3), %vm383_vm0, %v1554_v0  ;;  %385 = vst.msk [vmem:[#allocation4 + $0x8] sm:$0xff] (!%p280_p3), %vm383_vm0, %v1554_v0  ;;  %1394 = vmatprep.mubr.msk.bf16.mxu0 (!%p280_p3), %vm1555_vm1, %v1554_v0  ;;  %v1556_v4 = vmov (!%p280_p3), -inf   ;;  %v1557_v10 = vmov (!%p280_p3), 0   ;;  %s1559_s9 = smov (!%p280_p3), 112  }
   0x8   : > { %386 = vst.msk [vmem:[#allocation4 + $0x10] sm:$0xff] (!%p280_p3), %vm383_vm0, %v1554_v0  ;;  %387 = vst.msk [vmem:[#allocation4 + $0x18] sm:$0xff] (!%p280_p3), %vm383_vm0, %v1554_v0  ;;  %1398 = vmatprep.subr.bf16.mxu1 (!%p280_p3), %v1554_v0  ;;  %1400 = vmatprep.mubr.msk.bf16.mxu1 (!%p280_p3), %vm1555_vm1, %v1554_v0  ;;  %s1560_s10 = smov (!%p280_p3), 104   ;;  %vm473_vm3 = vcmask (!%p280_p3), 1043456   ;;  %vm1207_vm4 = vcmask (!%p280_p3), 261120  }
   0x9   : > { %375 = vst.msk [vmem:[#allocation2] sm:$0xff] (!%p280_p3), %vm374_vm2, %v1556_v4  ;;  %376 = vst.msk [vmem:[#allocation2 + $0x8] sm:$0xff] (!%p280_p3), %vm374_vm2, %v1556_v4  ;;  %1495 = vset.pattern.permute.xlu0 (!%p280_p3), %v1557_v10  ;;  %1496 = vset.pattern.permute.xlu1 (!%p280_p3), %v1557_v10 }
   0xa   : > { %377 = vst.msk [vmem:[#allocation2 + $0x10] sm:$0xff] (!%p280_p3), %vm374_vm2, %v1556_v4  ;;  %378 = vst.msk [vmem:[#allocation2 + $0x18] sm:$0xff] (!%p280_p3), %vm374_vm2, %v1556_v4 }
   0xb   : > { %379 = vst.msk [vmem:[#allocation3] sm:$0xff] (!%p280_p3), %vm374_vm2, %v1554_v0  ;;  %380 = vst.msk [vmem:[#allocation3 + $0x8] sm:$0xff] (!%p280_p3), %vm374_vm2, %v1554_v0 }
   0xc   : > { %381 = vst.msk [vmem:[#allocation3 + $0x10] sm:$0xff] (!%p280_p3), %vm374_vm2, %v1554_v0  ;;  %382 = vst.msk [vmem:[#allocation3 + $0x18] sm:$0xff] (!%p280_p3), %vm374_vm2, %v1554_v0 }
   0xe   : > { %s1825_s21 = smov (!%p334_p4, %s1544_s21), 1 }
   0xf   : > { %s1631_s25 = sshll.u32 %s1825_s21, 2  ;;  %s1339_s26 = sshll.u32 %s1825_s21, 3 }
  0x10   : > { %s1637_s28 = scalar_lea.vmem %s1814_s1, %s1631_s25  ;;  %s1644_s7 = scalar_lea.vmem %s1813_s0, %s1631_s25  ;;  %v1677_v17 = vld [vmem:[#allocation2] sm:$0xff]  ;;  %v580_v56 = vld [vmem:[#allocation2 + $0x8] sm:$0xff] }
  0x11   : > { %v389_v1 = vld [vmem:[%s1637_s28] sm:$0xf]  ;;  %s1691_s13 = scalar_lea.vmem %s1815_s2, %s1631_s25  ;;  %s361_s29 = scalar_lea.vmem %s1816_s3, %s1339_s26 }
  0x12   : > { %v396_v2 = vsel %vm383_vm0, %v389_v1, 0  ;;  %v388_v3 = vld [vmem:[%s1644_s7] sm:$0xf]  ;;  %v874_v1 = vld [vmem:[#allocation2 + $0x18] sm:$0xff]  ;;  %s368_s21 = scalar_lea.vmem %s1819_s6, %s1339_s26 }
  0x13   : > { %1393 = vmatpush3.bf16.xpose.msra.mxu0 %v396_v2  ;;  %v1497_v11 = vld [vmem:[%s1637_s28] ss:$0 sps:$4 sm:$0xff]  }
  0x14   : > { %1410 = vmatprep.subr.bf16.mxu0 %v1554_v0  ;;  %531 = vrot.lane.b32.xlu1 %v1497_v11, %s1558_s8  ;;  %v1498_v12 = vld [vmem:[%s1644_s7] ss:$0 sps:$4 sm:$0xff]  }
  0x15   : > { %v1499_v13 = vld [vmem:[%s1637_s28] ss:$0 sps:$4 sm:$0xff]  }
  0x16   : > { %v1500_v14 = vld [vmem:[%s1644_s7] ss:$0 sps:$4 sm:$0xff]  }
  0x17   : > { %v1501_v15 = vld [vmem:[%s1637_s28] ss:$0 sps:$4 sm:$0xff]  }
  0x18   : > { %526 = vrot.lane.b32.xlu1 %v1498_v12, %s1558_s8  ;;  %v1502_v16 = vld [vmem:[%s1644_s7] ss:$0 sps:$4 sm:$0xff]  }
  0x19   : > { %v390_v21 = vld [vmem:[%s1691_s13] sm:$0xf] }
  0x1a   : > { %1395 = vmatmul.mubr.msk.bf16.vlgmr.msra.gmra.mrb[0].mxu0 %vm383_vm0, %v388_v3  ;;  %v475_v22 = vsel %vm473_vm3, %v390_v21, 0  ;;  %v1724_v60 = vld [vmem:[#allocation2 + $0x10] sm:$0xff] }
  0x1b   : > { %1412 = vmatprep.mubr.msk.bf16.mxu0 %vm1555_vm1, %v1554_v0  ;;  %1399 = vmatpush3.bf16.msra.mxu1 %v475_v22 }
  0x1c   : > { %678 = vrot.lane.b32.xlu1 %v1499_v13, %s1559_s9  ;;  %1404 = vmatprep.subr.bf16.mxu1 %v1554_v0 }
  0x20   : > { %673 = vrot.lane.b32.xlu1 %v1500_v14, %s1559_s9 }
  0x24   : > { %825 = vrot.lane.b32.xlu1 %v1501_v15, %s1560_s10 }
  0x28   : > { %820 = vrot.lane.b32.xlu1 %v1502_v16, %s1560_s10 }
  0x86   : > { %v532_v26 = vpop.permute.xlu1 %531 }
  0x87   : > { %v537_v29 = vsel %vm383_vm0, %v532_v26, 0 }
  0x8a   : > { %v527_v27 = vpop.permute.xlu1 %526 }
  0x8e   : > { %v679_v31 = vpop.permute.xlu1 %678 }
  0x8f   : > { %v684_v33 = vsel %vm383_vm0, %v679_v31, 0 }
  0x92   : > { %v674_v32 = vpop.permute.xlu1 %673 }
  0x96   : > { %v826_v34 = vpop.permute.xlu1 %825 }
  0x97   : > { %v831_v35 = vsel %vm383_vm0, %v826_v34, 0 }
  0x9a   : > { %v821_v36 = vpop.permute.xlu1 %820 }
  0xed   : > { %v432_v5 = vpop.f32.mrb[0].mxu0 }
  0xee   : > { %v1396_v6 = vpop.f32.mrb[1].mxu0  ;;  %v439_v7 = vsel %vm383_vm0, %v432_v5, -inf }
  0xef   : > { %440 = vmax.xlane.f32.xlu0 %v439_v7  ;;  %v435_v8 = vpop.f32.mrb[2].mxu0  ;;  %v1504_v6 = vld [vmem:[%s1691_s13] ss:$0 sps:$4 sm:$0xff]  }
  0xf0   : > { %v1397_v9 = vpop.f32.mrb[3].mxu0  ;;  %v1505_v7 = vld [vmem:[%s1691_s13] ss:$0 sps:$4 sm:$0xff]  }
 0x17c   : > { %v441_v18 = vpop.xlane.xlu0 %440 }
 0x17d   : > { %v1680_v19 = vmax.f32 %v1677_v17, %v441_v18 }
 0x17f   : > { %v443_v20 = vsub.f32 %v1677_v17, %v1680_v19  ;;  %519 = vst.msk [vmem:[#allocation2] sm:$0xff] %vm374_vm2, %v1680_v19  ;;  %448 = vperm.xlu0 %1495, %v1680_v19  }
 0x1fe   : > { %v449_v23 = vpop.permute.xlu0 %448 }
 0x1ff   : > { %v451_v24 = vsub.f32 %v432_v5, %v449_v23  ;;  %v1503_v5 = vld [vmem:[%s1691_s13] ss:$0 sps:$4 sm:$0xff]  }
 0x201   : > { %v452_v25 = vmul.f32 1.442695, %v451_v24 }
 0x203   : > { %1506 = vpow2.f32 %v452_v25 }
 0x20d   : > { %v1696_v28 = vpop.eup %1506 }
 0x20e   : > { %v469_v30 = vpack.c.bf16 %v1696_v28, %v1696_v28  ;;  %v456_v8 = vsel %vm383_vm0, %v1696_v28, 0.0 }
 0x210   : > { %1401 = vmatmul.mubr.msk.bf16.vlgmr.msra.gmra.mrb[0].mxu1 %vm383_vm0, %v469_v30 }
 0x211   : > { %1405 = vmatpush3.bf16.xpose.msra.mxu1 %v537_v29  ;;  %1406 = vmatprep.mubr.msk.bf16.mxu1 %vm1555_vm1, %v1554_v0 }
 0x212   : > { %1416 = vmatprep.subr.bf16.mxu1 %v1554_v0 }
 0x218   : > { %1407 = vmatmul.mubr.msk.bf16.vlgmr.msra.gmra.mrb[4].mxu1 %vm383_vm0, %v527_v27 }
 0x219   : > { %1417 = vmatpush3.bf16.xpose.msra.mxu1 %v684_v33  ;;  %1418 = vmatprep.mubr.msk.bf16.mxu1 %vm1555_vm1, %v1554_v0 }
 0x21a   : > { %1428 = vmatprep.subr.bf16.mxu1 %v1554_v0 }
 0x220   : > { %1419 = vmatmul.mubr.msk.bf16.vlgmr.msra.gmra.mrb[8].mxu1 %vm383_vm0, %v674_v32 }
 0x221   : > { %1429 = vmatpush3.bf16.xpose.msra.mxu1 %v831_v35  ;;  %1430 = vmatprep.mubr.msk.bf16.mxu1 %vm1555_vm1, %v1554_v0 }
 0x222   : > { %1440 = vmatprep.subr.bf16.mxu1 %v1554_v0 }
 0x228   : > { %1431 = vmatmul.mubr.msk.bf16.vlgmr.msra.gmra.mrb[12].mxu1 %vm383_vm0, %v821_v36  ;;  %v444_v36 = vmul.f32 1.442695, %v443_v20 }
 0x229   : > { %1442 = vmatprep.mubr.msk.bf16.mxu1 %vm1555_vm1, %v1554_v0 }
 0x2e3   : > { %v1718_v37 = vpop.f32.mrb[0].mxu1 }
 0x2e4   : > { %v1402_v38 = vpop.f32.mrb[1].mxu1 }
 0x2e5   : > { %v514_v39 = vpop.f32.mrb[2].mxu1 }
 0x2e6   : > { %v1403_v40 = vpop.f32.mrb[3].mxu1 }
 0x2eb   : > { %v573_v41 = vpop.f32.mrb[4].mxu1 }
 0x2ec   : > { %v1408_v42 = vpop.f32.mrb[5].mxu1  ;;  %v581_v43 = vsel %vm383_vm0, %v573_v41, -inf }
 0x2ed   : > { %582 = vmax.xlane.f32.xlu1 %v581_v43  ;;  %v576_v44 = vpop.f32.mrb[6].mxu1  ;;  %v454_v43 = vld [vmem:[#allocation3] sm:$0xff] }
 0x2ee   : > { %v1409_v45 = vpop.f32.mrb[7].mxu1 }
 0x2f3   : > { %v720_v46 = vpop.f32.mrb[8].mxu1 }
 0x2f4   : > { %v1420_v47 = vpop.f32.mrb[9].mxu1  ;;  %v728_v48 = vsel %vm383_vm0, %v720_v46, -inf }
 0x2f5   : > { %729 = vmax.xlane.f32.xlu0 %v728_v48  ;;  %v723_v49 = vpop.f32.mrb[10].mxu1  ;;  %v980_v48 = vld [vmem:[%s1817_s4] sm:$0xf] }
 0x2f6   : > { %v1421_v50 = vpop.f32.mrb[11].mxu1  ;;  %v1041_v49 = vsel %vm473_vm3, %v980_v48, 0 }
 0x2f7   : > { %v597_v50 = vld [vmem:[#allocation3 + $0x8] sm:$0xff] }
 0x2fb   : > { %v867_v51 = vpop.f32.mrb[12].mxu1 }
 0x2fc   : > { %v1432_v52 = vpop.f32.mrb[13].mxu1  ;;  %v875_v53 = vsel %vm383_vm0, %v867_v51, -inf }
 0x2fd   : > { %876 = vmax.xlane.f32.xlu1 %v875_v53  ;;  %v870_v54 = vpop.f32.mrb[14].mxu1 }
 0x2fe   : > { %v1433_v55 = vpop.f32.mrb[15].mxu1  ;;  %v744_v54 = vld [vmem:[#allocation3 + $0x10] sm:$0xff] }
 0x37a   : > { %v583_v57 = vpop.xlane.xlu1 %582 }
 0x37b   : > { %v584_v58 = vmax.f32 %v580_v56, %v583_v57 }
 0x37d   : > { %v585_v59 = vsub.f32 %v580_v56, %v584_v58  ;;  %666 = vst.msk [vmem:[#allocation2 + $0x8] sm:$0xff] %vm374_vm2, %v584_v58  ;;  %590 = vperm.xlu1 %1496, %v584_v58  }
 0x37f   : > { %v586_v34 = vmul.f32 1.442695, %v585_v59  ;;  %v891_v59 = vld [vmem:[#allocation3 + $0x18] sm:$0xff] }
 0x382   : > { %v730_v61 = vpop.xlane.xlu0 %729 }
 0x383   : > { %v731_v62 = vmax.f32 %v1724_v60, %v730_v61 }
 0x385   : > { %v732_v63 = vsub.f32 %v1724_v60, %v731_v62  ;;  %813 = vst.msk [vmem:[#allocation2 + $0x10] sm:$0xff] %vm374_vm2, %v731_v62  ;;  %737 = vperm.xlu0 %1495, %v731_v62  }
 0x387   : > { %v733_v39 = vmul.f32 1.442695, %v732_v63  ;;  %v462_v63 = vld [vmem:[#allocation4] sm:$0xff] }
 0x38a   : > { %v877_v2 = vpop.xlane.xlu1 %876 }
 0x38b   : > { %v878_v3 = vmax.f32 %v874_v1, %v877_v2 }
 0x38d   : > { %v879_v4 = vsub.f32 %v874_v1, %v878_v3  ;;  %960 = vst.msk [vmem:[#allocation2 + $0x18] sm:$0xff] %vm374_vm2, %v878_v3  ;;  %884 = vperm.xlu1 %1496, %v878_v3  }
 0x38f   : > { %v880_v38 = vmul.f32 1.442695, %v879_v4 }
 0x391   : > { %616 = vrot.lane.b32.xlu1 %v1503_v5, %s1558_s8  ;;  %v1358_v5 = vld [vmem:[%s1817_s4 + $0x4] sm:$0xf] }
 0x395   : > { %763 = vrot.lane.b32.xlu1 %v1504_v6, %s1559_s9  ;;  %v995_v6 = vsel %vm473_vm3, %v1358_v5, 0 }
 0x396   : > { %1441 = vmatpush3.bf16.msra.mxu1 %v995_v6  ;;  %v1197_v6 = vld [vmem:[%s361_s29] sm:$0xff] }
 0x397   : > { %1452 = vmatprep.subr.bf16.mxu1 %v1554_v0 }
 0x399   : > { %910 = vrot.lane.b32.xlu1 %v1505_v7, %s1560_s10 }
 0x3a4   : > { %457 = vadd.xlane.f32.xlu0 %v456_v8 }
 0x3fc   : > { %v591_v9 = vpop.permute.xlu1 %590 }
 0x3fd   : > { %v593_v10 = vsub.f32 %v573_v41, %v591_v9 }
 0x3ff   : > { %v594_v11 = vmul.f32 1.442695, %v593_v10 }
 0x401   : > { %1508 = vpow2.f32 %v594_v11 }
 0x404   : > { %v738_v12 = vpop.permute.xlu0 %737 }
 0x405   : > { %v740_v13 = vsub.f32 %v720_v46, %v738_v12 }
 0x407   : > { %v741_v14 = vmul.f32 1.442695, %v740_v13 }
 0x409   : > { %1510 = vpow2.f32 %v741_v14 }
 0x40b   : > { %v1509_v15 = vpop.eup %1508 }
 0x40c   : > { %v885_v16 = vpop.permute.xlu1 %884  ;;  %v599_v18 = vsel %vm383_vm0, %v1509_v15, 0.0  ;;  %v612_v26 = vpack.c.bf16 %v1509_v15, %v1509_v15  ;;  %v1363_v15 = vld [vmem:[%s1817_s4 + $0xc] sm:$0xf] }
 0x40d   : > { %v887_v21 = vsub.f32 %v867_v51, %v885_v16  ;;  %600 = vadd.xlane.f32.xlu1 %v599_v18  ;;  %v1154_v18 = vsel %vm473_vm3, %v1363_v15, 0 }
 0x40f   : > { %v888_v22 = vmul.f32 1.442695, %v887_v21  ;;  %v605_v21 = vld [vmem:[#allocation4 + $0x8] sm:$0xff] }
 0x410   : > { %v617_v23 = vpop.permute.xlu1 %616 }
 0x411   : > { %1512 = vpow2.f32 %v888_v22  ;;  %v622_v24 = vsel %vm473_vm3, %v617_v23, 0 }
 0x412   : > { %1411 = vmatpush3.bf16.msra.mxu0 %v622_v24  ;;  %1514 = vpow2.f32 %v586_v34 }
 0x413   : > { %v1511_v25 = vpop.eup %1510  ;;  %1422 = vmatprep.subr.bf16.mxu0 %v1554_v0  ;;  %1516 = vpow2.f32 %v444_v36  ;;  %v899_v36 = vld [vmem:[#allocation4 + $0x18] sm:$0xff] }
 0x414   : > { %v746_v27 = vsel %vm383_vm0, %v1511_v25, 0.0  ;;  %v764_v28 = vpop.permute.xlu1 %763  ;;  %v759_v32 = vpack.c.bf16 %v1511_v25, %v1511_v25  ;;  %1518 = vpow2.f32 %v880_v38 }
 0x415   : > { %1413 = vmatmul.mubr.msk.bf16.vlgmr.msra.gmra.mrb[4].mxu0 %vm383_vm0, %v612_v26  ;;  %747 = vadd.xlane.f32.xlu0 %v746_v27  ;;  %v769_v29 = vsel %vm473_vm3, %v764_v28, 0  ;;  %1520 = vpow2.f32 %v733_v39  ;;  %v752_v28 = vld [vmem:[#allocation4 + $0x10] sm:$0xff] }
 0x416   : > { %1423 = vmatpush3.bf16.msra.mxu0 %v769_v29  ;;  %1424 = vmatprep.mubr.msk.bf16.mxu0 %vm1555_vm1, %v1554_v0 }
 0x417   : > { %1434 = vmatprep.subr.bf16.mxu0 %v1554_v0 }
 0x418   : > { %v911_v30 = vpop.permute.xlu1 %910 }
 0x419   : > { %v916_v33 = vsel %vm473_vm3, %v911_v30, 0 }
 0x41b   : > { %v1513_v31 = vpop.eup %1512 }
 0x41c   : > { %v893_v35 = vsel %vm383_vm0, %v1513_v31, 0.0  ;;  %v906_v40 = vpack.c.bf16 %v1513_v31, %v1513_v31  ;;  %v1515_v41 = vpop.eup %1514 }
 0x41d   : > { %894 = vadd.xlane.f32.xlu1 %v893_v35  ;;  %1425 = vmatmul.mubr.msk.bf16.vlgmr.msra.gmra.mrb[8].mxu0 %vm383_vm0, %v759_v32  ;;  %v1517_v42 = vpop.eup %1516  ;;  %v598_v51 = vmul.f32 %v1515_v41, %v597_v50 }
 0x41e   : > { %1435 = vmatpush3.bf16.msra.mxu0 %v916_v33  ;;  %1436 = vmatprep.mubr.msk.bf16.mxu0 %vm1555_vm1, %v1554_v0  ;;  %v1519_v17 = vpop.eup %1518  ;;  %v455_v19 = vmul.f32 %v1517_v42, %v454_v43 }
 0x41f   : > { %1446 = vmatprep.subr.bf16.mxu0 %v1554_v0  ;;  %v1521_v20 = vpop.eup %1520  ;;  %v892_v60 = vmul.f32 %v1519_v17, %v891_v59 }
 0x420   : > { %v745_v55 = vmul.f32 %v1521_v20, %v744_v54 }
 0x425   : > { %1437 = vmatmul.mubr.msk.bf16.vlgmr.msra.gmra.mrb[12].mxu0 %vm383_vm0, %v906_v40 }
 0x426   : > { %1448 = vmatprep.mubr.msk.bf16.mxu0 %vm1555_vm1, %v1554_v0  ;;  %1447 = vmatpush3.bf16.msra.mxu0 %v1041_v49 }
 0x427   : > { %1458 = vmatprep.subr.bf16.mxu0 %v1554_v0 }
 0x42b   : > { %608 = vperm.xlu0 %1495, %v1515_v41  }
 0x42e   : > { %465 = vperm.xlu1 %1496, %v1517_v42  }
 0x42f   : > { %902 = vperm.xlu0 %1495, %v1519_v17  }
 0x431   : > { %v458_v44 = vpop.xlane.xlu0 %457 }
 0x432   : > { %v459_v45 = vadd.f32 %v458_v44, %v455_v19  ;;  %755 = vperm.xlu1 %1496, %v1521_v20   ;;  %v1361_v20 = vld [vmem:[%s1817_s4 + $0x8] sm:$0xf] }
 0x434   : > { %461 = vst.msk [vmem:[#allocation3] sm:$0xff] %vm374_vm2, %v459_v45 }
 0x43b   : > { %v964_v46 = vld [vmem:[#allocation3] sm:$0xff] }
 0x43c   : > { %1522 = vrcp.f32 %v964_v46  ;;  %v1097_v46 = vsel %vm473_vm3, %v1361_v20, 0 }
 0x446   : > { %v1523_v47 = vpop.eup %1522 }
 0x447   : > { %975 = vperm.xlu0 %1495, %v1523_v47  }
 0x49a   : > { %v601_v52 = vpop.xlane.xlu1 %600 }
 0x49b   : > { %v602_v53 = vadd.f32 %v601_v52, %v598_v51 }
 0x49d   : > { %603 = vst.msk [vmem:[#allocation3 + $0x8] sm:$0xff] %vm374_vm2, %v602_v53 }
 0x4a2   : > { %v748_v56 = vpop.xlane.xlu0 %747 }
 0x4a3   : > { %v749_v57 = vadd.f32 %v748_v56, %v745_v55 }
 0x4a4   : > { %v965_v58 = vld [vmem:[#allocation3 + $0x8] sm:$0xff] }
 0x4a5   : > { %750 = vst.msk [vmem:[#allocation3 + $0x10] sm:$0xff] %vm374_vm2, %v749_v57  ;;  %1524 = vrcp.f32 %v965_v58 }
 0x4aa   : > { %v895_v61 = vpop.xlane.xlu1 %894  ;;  %v609_v10 = vpop.permute.xlu0 %608 }
 0x4ab   : > { %v896_v62 = vadd.f32 %v895_v61, %v892_v60  ;;  %v611_v22 = vmul.f32 %v609_v10, %v605_v21 }
 0x4ac   : > { %v966_v1 = vld [vmem:[#allocation3 + $0x10] sm:$0xff] }
 0x4ad   : > { %897 = vst.msk [vmem:[#allocation3 + $0x18] sm:$0xff] %vm374_vm2, %v896_v62  ;;  %1526 = vrcp.f32 %v966_v1 }
 0x4ae   : > { %v466_v2 = vpop.permute.xlu1 %465  ;;  %v903_v12 = vpop.permute.xlu0 %902 }
 0x4af   : > { %v1525_v3 = vpop.eup %1524  ;;  %v468_v4 = vmul.f32 %v466_v2, %v462_v63  ;;  %v905_v38 = vmul.f32 %v903_v12, %v899_v36 }
 0x4b0   : > { %984 = vperm.xlu1 %1496, %v1525_v3  }
 0x4b1   : > { %v517_v7 = vadd.f32 %v1718_v37, %v468_v4 }
 0x4b2   : > { %v756_v29 = vpop.permute.xlu1 %755 }
 0x4b3   : > { %518 = vst.msk [vmem:[#allocation4] sm:$0xff] %vm383_vm0, %v517_v7  ;;  %v758_v30 = vmul.f32 %v756_v29, %v752_v28 }
 0x4b4   : > { %v967_v8 = vld [vmem:[#allocation3 + $0x18] sm:$0xff] }
 0x4b5   : > { %1528 = vrcp.f32 %v967_v8 }
 0x4b7   : > { %v1527_v9 = vpop.eup %1526 }
 0x4b8   : > { %1086 = vperm.xlu1 %1496, %v1527_v9   ;;  %v1365_v9 = vld [vmem:[%s1818_s5] ss:$0 sm:$0xff] }
 0x4ba   : > { %v972_v13 = vld [vmem:[#allocation4] sm:$0xff] }
 0x4bf   : > { %v1529_v11 = vpop.eup %1528 }
 0x4c0   : > { %1143 = vperm.xlu0 %1495, %v1529_v11  }
 0x4c6   : > { %v976_v14 = vpop.permute.xlu0 %975 }
 0x4c7   : > { %v978_v37 = vmul.f32 %v976_v14, %v972_v13 }
 0x4c9   : > { %v979_v16 = vpack.c.bf16 %v978_v37, %v978_v37 }
 0x4cb   : > { %1449 = vmatmul.mubr.msk.bf16.vlgmr.msra.gmra.mrb[16].mxu0 %vm383_vm0, %v979_v16 }
 0x4cc   : > { %1459 = vmatpush3.bf16.msra.mxu0 %v1154_v18  ;;  %1460 = vmatprep.mubr.msk.bf16.mxu0 %vm1555_vm1, %v1554_v0 }
 0x4e8   : > { %v658_v23 = vpop.f32.mrb[4].mxu0 }
 0x4e9   : > { %v664_v24 = vadd.f32 %v658_v23, %v611_v22  ;;  %v1414_v25 = vpop.f32.mrb[5].mxu0 }
 0x4ea   : > { %v661_v26 = vpop.f32.mrb[6].mxu0 }
 0x4eb   : > { %665 = vst.msk [vmem:[#allocation4 + $0x8] sm:$0xff] %vm383_vm0, %v664_v24  ;;  %v1415_v27 = vpop.f32.mrb[7].mxu0 }
 0x4f0   : > { %v805_v31 = vpop.f32.mrb[8].mxu0 }
 0x4f1   : > { %v811_v32 = vadd.f32 %v805_v31, %v758_v30  ;;  %v1426_v33 = vpop.f32.mrb[9].mxu0 }
 0x4f2   : > { %v808_v34 = vpop.f32.mrb[10].mxu0  ;;  %v981_v19 = vld [vmem:[#allocation4 + $0x8] sm:$0xff] }
 0x4f3   : > { %812 = vst.msk [vmem:[#allocation4 + $0x10] sm:$0xff] %vm383_vm0, %v811_v32  ;;  %v1427_v35 = vpop.f32.mrb[11].mxu0 }
 0x4f8   : > { %v952_v39 = vpop.f32.mrb[12].mxu0 }
 0x4f9   : > { %v958_v40 = vadd.f32 %v952_v39, %v905_v38  ;;  %v1438_v41 = vpop.f32.mrb[13].mxu0 }
 0x4fa   : > { %v955_v42 = vpop.f32.mrb[14].mxu0  ;;  %v1083_v48 = vld [vmem:[#allocation4 + $0x10] sm:$0xff] }
 0x4fb   : > { %959 = vst.msk [vmem:[#allocation4 + $0x18] sm:$0xff] %vm383_vm0, %v958_v40  ;;  %v1439_v43 = vpop.f32.mrb[15].mxu0 }
 0x502   : > { %v1140_v52 = vld [vmem:[#allocation4 + $0x18] sm:$0xff] }
 0x52f   : > { %v985_v17 = vpop.permute.xlu1 %984 }
 0x530   : > { %v987_v44 = vmul.f32 %v985_v17, %v981_v19 }
 0x532   : > { %v988_v45 = vpack.c.bf16 %v987_v44, %v987_v44 }
 0x534   : > { %1443 = vmatmul.mubr.msk.bf16.vlgmr.msra.gmra.mrb[16].mxu1 %vm383_vm0, %v988_v45 }
 0x535   : > { %1453 = vmatpush3.bf16.msra.mxu1 %v1097_v46  ;;  %1454 = vmatprep.mubr.msk.bf16.mxu1 %vm1555_vm1, %v1554_v0 }
 0x537   : > { %v1087_v47 = vpop.permute.xlu1 %1086 }
 0x538   : > { %v1089_v49 = vmul.f32 %v1087_v47, %v1083_v48 }
 0x53a   : > { %v1090_v50 = vpack.c.bf16 %v1089_v49, %v1089_v49 }
 0x53c   : > { %1455 = vmatmul.mubr.msk.bf16.vlgmr.msra.gmra.mrb[20].mxu1 %vm383_vm0, %v1090_v50 }
 0x53f   : > { %v1144_v51 = vpop.permute.xlu0 %1143 }
 0x540   : > { %v1146_v53 = vmul.f32 %v1144_v51, %v1140_v52 }
 0x542   : > { %v1147_v54 = vpack.c.bf16 %v1146_v53, %v1146_v53 }
 0x544   : > { %1461 = vmatmul.mubr.msk.bf16.vlgmr.msra.gmra.mrb[20].mxu0 %vm383_vm0, %v1147_v54 }
 0x59e   : > { %v1077_v55 = vpop.f32.mrb[16].mxu0 }
 0x59f   : > { %v1450_v56 = vpop.f32.mrb[17].mxu0 }
 0x5a0   : > { %v1080_v57 = vpop.f32.mrb[18].mxu0 }
 0x5a1   : > { %v1451_v58 = vpop.f32.mrb[19].mxu0 }
 0x607   : > { %v1031_v59 = vpop.f32.mrb[16].mxu1 }
 0x608   : > { %v1078_v60 = vadd.f32 %v1077_v55, %v1031_v59  ;;  %v1444_v0 = vpop.f32.mrb[17].mxu1 }
 0x609   : > { %v1034_v61 = vpop.f32.mrb[18].mxu1 }
 0x60a   : > { %v1445_v62 = vpop.f32.mrb[19].mxu1 }
 0x60f   : > { %v1133_v63 = vpop.f32.mrb[20].mxu1 }
 0x610   : > { %v1139_v1 = vadd.f32 %v1133_v63, %v1078_v60  ;;  %v1456_v2 = vpop.f32.mrb[21].mxu1 }
 0x611   : > { %v1136_v3 = vpop.f32.mrb[22].mxu1 }
 0x612   : > { %v1457_v4 = vpop.f32.mrb[23].mxu1 }
 0x617   : > { %v1190_v5 = vpop.f32.mrb[20].mxu0 }
 0x618   : > { %v1196_v7 = vadd.f32 %v1190_v5, %v1139_v1  ;;  %v1462_v8 = vpop.f32.mrb[21].mxu0 }
 0x619   : > { %v1193_v10 = vpop.f32.mrb[22].mxu0 }
 0x61a   : > { %v1198_v11 = vadd.f32 %v1197_v6, %v1196_v7  ;;  %v1463_v12 = vpop.f32.mrb[23].mxu0 }
 0x61c   : > { %v1206_v13 = vadd.f32 %v1365_v9, %v1198_v11 }
 0x61e   : > { %1208 = vst.msk [vmem:[%s368_s21] sm:$0xff] %vm1207_vm4, %v1206_v13 }
 0x61f PF: > { %s16_s23 = sadd.s32 1, %s1552_s23   ;;  %s1820_s21 = smov %s1548_s22 }
 0x620   : > { %p13_p5 = scmp.ge.s32.totalorder %s16_s23, 4   ;;  %s1821_s22 = smov %s1823_s24 }
 0x622   :  { %15 = sbr.rel (!%p13_p5) target bundleno = 2 (0x2), region = 103 }

// kernel: encoder_forward.11
= control target key start
LH: loop header
LB: loop body
LE: loop exit
PB: predicated region body
PF: predicated region fallthrough
CT: control target
= control target key end

     0   :  { %12 = vsyncpa [#allocation3], 0  ;;  %s968_s0 = inlined_call_operand.vmem [shape: f32[2,8,32], index: 0, kind: input, shape index: {}]   ;;  %s969_s1 = inlined_call_operand.vmem [shape: f32[1,32], index: 1, kind: input, shape index: {}]   ;;  %s970_s2 = inlined_call_operand.vmem [shape: f32[1,32], index: 2, kind: input, shape index: {}]   ;;  %s971_s3 = inlined_call_operand.vmem [shape: bf16[32,64], index: 3, kind: input, shape index: {}]   ;;  %s972_s4 = inlined_call_operand.vmem [shape: f32[1,64], index: 4, kind: input, shape index: {}]   ;;  %s973_s5 = inlined_call_operand.vmem [shape: bf16[64,32], index: 5, kind: input, shape index: {}]   ;;  %s974_s6 = inlined_call_operand.vmem [shape: f32[1,32], index: 6, kind: input, shape index: {}]   ;;  %s975_s7 = inlined_call_operand.hbm [shape: f32[2,8,32], index: 7, kind: output, shape index: {}]  }
   0x1   :  { %14 = vsyncpa [#allocation3 + $0x1], 0  ;;  %s817_s24 = smov 0   ;;  %s819_s25 = smov 0  }
   0x2   :  { %s821_s26 = smov 0   ;;  %s823_s27 = smov 0  }
   0x3   :  { %s825_s28 = smov 0   ;;  %s827_s29 = smov 0  }
   0x4 LB: > { %s576_s30 = sadd.s32 4294967295, %s772_s29   ;;  %s577_s8 = sadd.s32 4294967294, %s772_s29   ;;  %s772_s29 = sphi %s827_s29, %s20_s29   ;;  %s768_s28 = sphi %s825_s28, %s982_s28   ;;  %s764_s27 = sphi %s823_s27, %s981_s27   ;;  %s760_s26 = sphi %s821_s26, %s980_s26   ;;  %s756_s25 = sphi %s819_s25, %s979_s25   ;;  %s752_s24 = sphi %s817_s24, %s978_s24  }
   0x5   : > { %s32_s9 = sadd.s32 1, %s768_s28  ;;  %s195_s10 = sadd.s32 1, %s760_s26 }
   0x6   : > { %p34_p0 = scmp.ge.s32.totalorder %s32_s9, 2  ;;  %p205_p1 = scmp.ne.s32.totalorder %s760_s26, %s756_s25 }
   0x7   : > { %p206_p2 = scmp.eq.s32.totalorder %s576_s30, 1  ;;  %p211_p3 = scmp.ne.s32.totalorder %s756_s25, %s752_s24 }
   0x8   : > { %s984_s9 = smov (%p34_p0, %s32_s9), 0  ;;  %p212_p5 = scmp.eq.s32.totalorder %s577_s8, 1 }
   0x9   : > { %p857_p4 = por %p206_p2, %p205_p1  ;;  %s190_s12 = ssub.s32 %s768_s28, %s984_s9 }
   0xa   : > { %p580_p6 = scmp.ge.s32.totalorder %s772_s29, 1  ;;  %p193_p7 = scmp.eq.s32.totalorder %s190_s12, 0 }
   0xb   : > { %p864_p8 = por %p212_p5, %p211_p3  ;;  %p258_p9 = scmp.lt.s32.totalorder %s772_s29, 3 }
   0xc   : > { %s870_s14 = scalar_select %p193_p7, %s760_s26, %s195_s10  }
   0xd   : > { %p259_p10 = pnand %p580_p6, %p258_p9 }
   0xe   : > { %p292_p11 = scmp.lt.s32.totalorder (!%p259_p10), %s764_s27, 1  ;;  %vm303_vm0 = vcmask (!%p259_p10), 261120   ;;  %v684_v7 = vld [vmem:[%s971_s3] sm:$0xff] (!%p259_p10)   ;;  %v774_v8 = vmov (!%p259_p10), 0.0   ;;  %v685_v9 = vld [vmem:[%s971_s3 + $0x8] sm:$0xff] (!%p259_p10)   ;;  %vm775_vm1 = vmmov (!%p259_p10), 0  }
   0xf   : > { %262 = sbr.rel (%p259_p10) target bundleno = 805 (0x325), region = 48  ;;  %607 = vmatprep.subr.bf16.mxu0 (!%p259_p10), %v774_v8  ;;  %615 = vmatprep.subr.bf16.mxu1 (!%p259_p10), %v774_v8  ;;  %v583_v14 = vld [vmem:[%s969_s1] ss:$0 sm:$0xff] (!%p259_p10)  ;;  %v687_v21 = vld [vmem:[%s973_s5 + $0x8] sm:$0xff] (!%p259_p10)   ;;  %v688_v22 = vld [vmem:[%s973_s5 + $0x10] sm:$0xff] (!%p259_p10)   ;;  %vm444_vm2 = vcmask (!%p259_p10), 523264  }
  0x10   : > { %608 = vmatpush3.bf16.msra.mxu0 (!%p259_p10), %v684_v7  ;;  %611 = vmatprep.mubr.msk.bf16.mxu0 (!%p259_p10), %vm775_vm1, %v774_v8  ;;  %v584_v16 = vld [vmem:[%s970_s2] ss:$0 sm:$0xff] (!%p259_p10)  ;;  %v689_v23 = vld [vmem:[%s973_s5 + $0x18] sm:$0xff] (!%p259_p10)   ;;  %s289_s8 = sand.u32 (!%p259_p10), 1, %s756_s25   ;;  %s776_s23 = smov (!%p259_p10), [#allocation2]  }
  0x11   : > { %609 = vmatprep.subr.bf16.mxu0 (!%p259_p10), %v774_v8  ;;  %623 = vmatprep.mubr.msk.bf16.mxu1 (!%p259_p10), %vm775_vm1, %v774_v8  ;;  %v686_v20 = vld [vmem:[%s973_s5] sm:$0xff] (!%p259_p10)   ;;  %s581_s10 = sshll.u32 (!%p259_p10), %s289_s8, 3  ;;  %s698_s30 = sshll.u32 (!%p259_p10), %s776_s23, 4  ;;  %s699_s30 = int_to_ptr.vmem [resolvable:$false] %s698_s30 }
  0x12   : > { %616 = vmatpush3.bf16.msra.mxu1 (!%p259_p10), %v686_v20  ;;  %v585_v24 = vld [vmem:[%s972_s4] ss:$0 sm:$0xff] (!%p259_p10)  ;;  %s291_s17 = scalar_lea.vmem (!%p259_p10), [#allocation2], %s581_s10  ;;  %s700_s10 = scalar_lea.vmem (!%p259_p10), %s699_s30, 256 }
  0x13   : > { %617 = vmatprep.subr.bf16.mxu1 (!%p259_p10), %v774_v8  ;;  %v589_v36 = vld [vmem:[%s974_s6] ss:$0 sm:$0xff] (!%p259_p10)  ;;  %s505_s18 = sshll.u32 (!%p259_p10), %s291_s17, 4  ;;  %s922_s18 = int_to_ptr.vmem [resolvable:$true] %s505_s18 }
  0x14   : > { %610 = vmatpush3.bf16.msra.mxu0 (!%p259_p10), %v685_v9  ;;  %s694_s22 = scalar_lea.vmem (!%p259_p10), %s922_s18, 128  ;;  %p701_p1 = scmp.lt.s32.totalorder (!%p259_p10), %s922_s18, %s699_s30 }
  0x15   : > { %p695_p12 = scmp.ne.s32.totalorder (!%p259_p10), %s922_s18, %s694_s22  ;;  %p702_p2 = scmp.lt.s32.totalorder (!%p259_p10), %s700_s10, %s694_s22 }
  0x16   : > { %s293_s15 = scalar_select %p292_p11, %s764_s27, 1  ;;  %618 = vmatpush3.bf16.msra.mxu1 %v687_v21 }
  0x17   : > { %619 = vmatprep.subr.bf16.mxu1 %v774_v8  ;;  %p696_p13 = pnand %p695_p12, %p857_p4  ;;  %p703_p3 = por %p702_p2, %p701_p1 }
  0x18   : > { %s582_s16 = sshll.u32 %s293_s15, 3 }
  0x19   : > { %s298_s19 = scalar_lea.vmem %s968_s0, %s582_s16  ;;  %s596_s16 = sshll.u32 %s764_s27, 7 }
  0x1a   : > { %v877_v0 = vld [vmem:[%s298_s19] sm:$0xff]  ;;  %620 = vmatpush3.bf16.msra.mxu1 %v688_v22  ;;  %s920_s21 = scalar_lea.hbm %s975_s7, %s596_s16  ;;  %s491_s27 = scalar_lea.sflag [#allocation3], %s289_s8 }
  0x1b   : > { %v304_v1 = vsel %vm303_vm0, %v877_v0, 0.0  ;;  %621 = vmatprep.subr.bf16.mxu1 %v774_v8  ;;  %p697_p0 = pneg %p696_p13 }
  0x1c   : > { %305 = vadd.xlane.f32.xlu0 %v304_v1 }
  0x1d   : > { %p704_p5 = pnand %p703_p3, %p697_p0 }
  0x1e   : > { %622 = vmatpush3.bf16.msra.mxu1 %v689_v23 }
  0xa9   : > { %v306_v2 = vpop.xlane.xlu0 %305 }
  0xaa   : > { %v308_v3 = vmul.f32 0.03125, %v306_v2 }
  0xac   : > { %v309_v4 = vsub.f32 %v877_v0, %v308_v3 }
  0xae   : > { %v310_v5 = vmul.f32 %v309_v4, %v309_v4 }
  0xb0   : > { %v311_v6 = vsel %vm303_vm0, %v310_v5, 0.0 }
  0xb1   : > { %312 = vadd.xlane.f32.xlu0 %v311_v6 }
 0x13e   : > { %v313_v10 = vpop.xlane.xlu0 %312 }
 0x13f   : > { %v314_v11 = vmul.f32 0.03125, %v313_v10 }
 0x141   : > { %v315_v12 = vadd.f32 1e-05, %v314_v11 }
 0x143   : > { %690 = vrsqrt.f32 %v315_v12 }
 0x14d   : > { %v691_v13 = vpop.eup %690 }
 0x14e   : > { %v317_v15 = vmul.f32 %v691_v13, %v309_v4 }
 0x150   : > { %v324_v17 = vmul.f32 %v583_v14, %v317_v15 }
 0x152   : > { %v331_v18 = vadd.f32 %v584_v16, %v324_v17 }
 0x154   : > { %v332_v19 = vpack.c.bf16 %v331_v18, %v331_v18 }
 0x156   : > { %612 = vmatmul.mubr.msk.bf16.vlgmr.msra.gmra.mrb[0].mxu0 %vm303_vm0, %v332_v19 }
 0x229   : > { %v393_v25 = vpop.f32.mrb[0].mxu0 }
 0x22a   : > { %v394_v26 = vadd.f32 %v585_v24, %v393_v25  ;;  %v613_v27 = vpop.f32.mrb[1].mxu0 }
 0x22b   : > { %v396_v28 = vpop.f32.mrb[2].mxu0 }
 0x22c   : > { %v400_v29 = vmul.f32 0.70710677, %v394_v26  ;;  %v614_v30 = vpop.f32.mrb[3].mxu0  ;;  %v399_v32 = vmul.f32 0.5, %v394_v26 }
 0x22e   : > { %692 = verf.f32 %v400_v29 }
 0x238   : > { %v693_v31 = vpop.eup %692 }
 0x239   : > { %v402_v33 = vadd.f32 1.0, %v693_v31 }
 0x23b   : > { %v403_v34 = vmul.f32 %v402_v33, %v399_v32 }
 0x23d   : > { %v404_v35 = vpack.c.bf16 %v403_v34, %v403_v34 }
 0x23f   : > { %624 = vmatmul.mubr.msk.bf16.vlgmr.msra.gmra.mrb[0].mxu1 %vm444_vm2, %v404_v35 }
 0x312   : > { %v482_v37 = vpop.f32.mrb[0].mxu1 }
 0x313   : > { %v483_v38 = vadd.f32 %v589_v36, %v482_v37  ;;  %v625_v39 = vpop.f32.mrb[1].mxu1 }
 0x314   : > { %v485_v40 = vpop.f32.mrb[2].mxu1 }
 0x315   : > { %v488_v41 = vadd.f32 %v483_v38, %v877_v0  ;;  %v626_v42 = vpop.f32.mrb[3].mxu1 }
 0x317   : > { %489 = vst.msk [vmem:[%s291_s17] sm:$0xff] %vm303_vm0, %v488_v41 }
 0x318   : > { %707 = shalt.err (!%p704_p5)
}
 0x319   : > { %s708_s8 = scalar_lea.hbm %s920_s21, 128  ;;  %s712_s16 = scalar_lea.hbm %s975_s7, 256 }
 0x31a   : > { %p709_p6 = scmp.ne.s32.totalorder %s920_s21, %s708_s8  ;;  %p713_p10 = scmp.lt.u32.totalorder %s920_s21, %s975_s7 }
 0x31b   : > { %p714_p11 = scmp.lt.u32.totalorder %s712_s16, %s708_s8  ;;  %p716_p13 = scmp.lt.u32.totalorder %s708_s8, %s920_s21 }
 0x31c   : > { %p710_p7 = pnand %p709_p6, %p857_p4 }
 0x31d   : > { %p715_p12 = por %p714_p11, %p713_p10 }
 0x31e   : > { %p711_p9 = pneg %p710_p7 }
 0x31f   : > { %p717_p0 = por %p716_p13, %p715_p12 }
 0x321   : > { %p718_p1 = pnand %p717_p0, %p711_p9 }
 0x323   : > { %721 = shalt.err (!%p718_p1)
}
 0x324   : > { %627 = dma.vmem_to_hbm [thread:$0]  (%p857_p4), %s922_s18, 128, %s920_s21, %s491_s27  }
 0x325 PF: > { %p633_p2 = scmp.ge.s32.totalorder %s772_s29, 2  ;;  %s517_s20 = sand.u32 1, %s752_s24  }
 0x326   : > { %s518_s22 = scalar_lea.sflag [#allocation3], %s517_s20 }
 0x327   : > { %p630_p3 = pnand %p633_p2, %p864_p8 }
 0x329   : > { %747 = dma.done.wait (!%p630_p3), %s518_s22, 128  }
 0x32a   : > { %749 = vsyncadd (!%p630_p3), %s518_s22, 4294967168  ;;  %s20_s29 = sadd.s32 1, %s772_s29   ;;  %s978_s24 = smov %s756_s25 }
 0x32b   : > { %p17_p5 = scmp.ge.s32.totalorder %s20_s29, 4   ;;  %s979_s25 = smov %s760_s26 }
 0x32c   : > { %s980_s26 = smov %s870_s14  ;;  %s981_s27 = smov %s768_s28 }
 0x32d   : > { %s982_s28 = smov %s984_s9  ;;  %19 = sbr.rel (!%p17_p5) target bundleno = 4 (0x4), region = 83 }
 0x334   :  { %523 = vsyncpa [#allocation3], 1 }
 0x335   :  { %525 = vsyncpa [#allocation3 + $0x1], 1 }

</bundles_post_ra>
